<compile_context>
chip_gen: v5e
topology: v5e:2x2
jax: 0.10.0
libtpu: 0.0.40
codegen_flags: <defaults>
</compile_context>

<pallas_src>
import functools

import jax
import jax.numpy as jnp
from jax.experimental import pallas as pl
from jax.experimental.pallas import tpu as pltpu

# Problem configuration (module __init__ args s, b; plus #classes for the tail).
S = 8          # grid size s
B = 2          # boxes per cell b
C = 20         # number of classes
D = 3 * B + C  # feature channels per cell
L_COORD = 5.0
L_NOOBJ = 0.5


def _yolo_loss_kernel(pred_ref, true_ref, out_ref, *, s, b, l_coord, l_noobj):
    """One grid step: TB images -> one partial (un-normalized) loss value."""
    pred = pred_ref[...].astype(jnp.float32)   # (TB, S, S, D)
    true = true_ref[...].astype(jnp.float32)   # (TB, S, S, D)
    diff = pred - true

    inv_s = 1.0 / float(s)

    # Per-cell loss accumulator (TB, S, S, 1); one big reduction at the end.
    tc0 = true[..., 2:3]                                        # obj mask = true_conf of box 0
    cls_sq = jnp.sum(diff[..., 3 * b:] ** 2, axis=-1, keepdims=True)
    cell = tc0 * cls_sq                                         # class loss term

    # Box geometry. Grid offsets of compute_distance cancel in the subtraction,
    # so ious = 1 - sqrt((tx-px)^2 + (ty-py)^2) / s with no iota needed.
    coord_sq, ious = [], []
    max_iou = None
    for k in range(b):
        dx = diff[..., 3 * k:3 * k + 1]
        dy = diff[..., 3 * k + 1:3 * k + 2]
        d2 = dx * dx + dy * dy
        iou = 1.0 - jnp.sqrt(d2) * inv_s
        coord_sq.append(d2)
        ious.append(iou)
        max_iou = iou if max_iou is None else jnp.maximum(max_iou, iou)

    # First-max-wins one-hot over the box axis (matches torch max -> scatter_).
    selected = jnp.zeros_like(max_iou)
    pconf_sq_sum = jnp.zeros_like(max_iou)
    for k in range(b):
        pc = pred[..., 3 * k + 2:3 * k + 3]
        tc = true[..., 3 * k + 2:3 * k + 3]
        pc2 = pc * pc
        pconf_sq_sum = pconf_sq_sum + pc2
        m = jnp.where(ious[k] >= max_iou, 1.0 - selected, 0.0)
        selected = selected + m
        obj_k = m * tc                       # iou_mask * true_conf
        dconf = pc - ious[k]
        cell = cell + l_coord * obj_k * coord_sq[k]        # coord loss
        cell = cell + 2.0 * obj_k * dconf * dconf          # obj conf loss
        cell = cell + (tc - obj_k) * pc2                   # (1-iou_mask)*true_conf*conf^2

    cell = cell + l_noobj * (1.0 - tc0) * pconf_sq_sum     # no-obj conf loss

    total = jnp.sum(cell)
    # Lane-dense, full-width (unmasked) store of the per-block partial.
    out_ref[...] = jnp.full(out_ref.shape, total, dtype=jnp.float32)


def yolo_loss(pred, true, *, s=S, b=B, l_coord=L_COORD, l_noobj=L_NOOBJ,
              block_batch=32):
    """Forward of YOLOLoss. pred/true: (batch, s, s, 3*b + C)."""
    batch = pred.shape[0]
    d = pred.shape[-1]

    tb = max(1, min(block_batch, batch))
    nblocks = (batch + tb - 1) // tb
    padded = nblocks * tb
    if padded != batch:
        # Zero-padded images contribute exactly 0 to every loss term.
        pad = [(0, padded - batch)] + [(0, 0)] * (pred.ndim - 1)
        pred = jnp.pad(pred, pad)
        true = jnp.pad(true, pad)

    kern = functools.partial(_yolo_loss_kernel, s=s, b=b,
                             l_coord=l_coord, l_noobj=l_noobj)
    partials = pl.pallas_call(
        kern,
        out_shape=jax.ShapeDtypeStruct((nblocks, 8, 128), jnp.float32),
        grid_spec=pltpu.PrefetchScalarGridSpec(
            num_scalar_prefetch=0,
            grid=(nblocks,),
            in_specs=[
                pl.BlockSpec((tb, s, s, d), lambda n: (n, 0, 0, 0)),
                pl.BlockSpec((tb, s, s, d), lambda n: (n, 0, 0, 0)),
            ],
            out_specs=pl.BlockSpec((1, 8, 128), lambda n: (n, 0, 0)),
        ),
        compiler_params=pltpu.CompilerParams(
            dimension_semantics=("parallel",),
            vmem_limit_bytes=64 * 1024 * 1024),
    )(pred, true)
    # Tiny final reduction + normalization by the *true* batch size.
    return jnp.sum(partials[:, 0, 0]) / batch


def yolo_loss_ref(pred, true, s, b, l_coord, l_noobj):
    """Pure-JAX reference mirroring the PyTorch forward exactly."""
    batch = pred.shape[0]
    pk = pred[..., :3 * b].reshape(batch, s, s, b, 3)
    pred_coord, pred_conf = pk[..., 0:2], pk[..., 2]
    pred_classes = pred[..., 3 * b:]
    tk = true[..., :3 * b].reshape(batch, s, s, b, 3)
    true_coord, true_conf = tk[..., 0:2], tk[..., 2]
    true_classes = true[..., 3 * b:]

    obj_mask = true_conf[..., 0]
    no_obj_mask = 1.0 - obj_mask
    class_loss = jnp.sum(obj_mask * jnp.sum((pred_classes - true_classes) ** 2, -1))

    off_x = jnp.broadcast_to(jnp.arange(s, dtype=pred.dtype)[None, None, :, None],
                             (batch, s, s, b))
    off_y = jnp.broadcast_to(jnp.arange(s, dtype=pred.dtype)[None, :, None, None],
                             (batch, s, s, b))
    b1x = (true_coord[..., 0] + off_x) / s
    b1y = (true_coord[..., 1] + off_y) / s
    b2x = (pred_coord[..., 0] + off_x) / s
    b2y = (pred_coord[..., 1] + off_y) / s
    dist = jnp.sqrt((b1x - b2x) ** 2 + (b1y - b2y) ** 2)
    ious = 1.0 - dist
    idx = jnp.argmax(ious, axis=-1)
    iou_mask = jax.nn.one_hot(idx, b, dtype=pred.dtype)
    coord_obj_mask = iou_mask * true_conf
    coord_noobj_mask = (1.0 - iou_mask) * true_conf
    coord_loss = jnp.sum(coord_obj_mask * jnp.sum((pred_coord - true_coord) ** 2, -1))
    no_obj_conf_loss = jnp.sum(no_obj_mask * jnp.sum(pred_conf ** 2, -1))
    obj_conf_loss = jnp.sum(coord_obj_mask * (pred_conf - ious) ** 2)
    no_obj_conf_loss_2 = jnp.sum(coord_noobj_mask * pred_conf ** 2)
    return (l_coord * coord_loss + 2.0 * obj_conf_loss + no_obj_conf_loss_2
            + l_noobj * no_obj_conf_loss + class_loss) / batch


if __name__ == "__main__":
    key = jax.random.PRNGKey(0)
    k1, k2, k3, k4 = jax.random.split(key, 4)

    # Case 1: small batch (single block).
    batch = 2
    pred = jax.random.uniform(k1, (batch, S, S, D), dtype=jnp.float32)
    true = jax.random.uniform(k2, (batch, S, S, D), dtype=jnp.float32)
    loss = yolo_loss(pred, true)
    jax.block_until_ready(loss)
    ref = yolo_loss_ref(pred, true, S, B, L_COORD, L_NOOBJ)
    assert jnp.allclose(loss, ref, rtol=1e-5, atol=1e-4), (loss, ref)

    # Case 2: batch not divisible by the block size (multi-block + zero-pad tail).
    batch2 = 5
    pred2 = jax.random.uniform(k3, (batch2, S, S, D), dtype=jnp.float32)
    true2 = jax.random.uniform(k4, (batch2, S, S, D), dtype=jnp.float32)
    loss2 = yolo_loss(pred2, true2, block_batch=4)
    jax.block_until_ready(loss2)
    ref2 = yolo_loss_ref(pred2, true2, S, B, L_COORD, L_NOOBJ)
    assert jnp.allclose(loss2, ref2, rtol=1e-5, atol=1e-4), (loss2, ref2)

    print("KERNEL_OK")
</pallas_src>

<mosaic_0001>
module attributes {stable_mosaic.version = 11 : i64} {
  func.func @_yolo_loss_kernel(%arg0: i32, %arg1: memref<2x8x8x26xf32, #tpu.memory_space<vmem>>, %arg2: memref<2x8x8x26xf32, #tpu.memory_space<vmem>>, %arg3: memref<1x8x128xf32, #tpu.memory_space<vmem>>) attributes {dimension_semantics = [#tpu.dimension_semantics<parallel>], iteration_bounds = array<i64: 1>, scalar_prefetch = 0 : i64, scratch_operands = 0 : i64, tpu.core_type = #tpu.core_type<tc>, window_params = [{transform_indices = @transform_0, window_bounds = array<i64: 2, 8, 8, 26>}, {transform_indices = @transform_1, window_bounds = array<i64: 2, 8, 8, 26>}, {transform_indices = @transform_2, window_bounds = array<i64: 1, 8, 128>}]} {
    %c0 = arith.constant 0 : index
    %c0_0 = arith.constant 0 : index
    %c0_1 = arith.constant 0 : index
    %c0_2 = arith.constant 0 : index
    %0 = vector.load %arg1[%c0, %c0_0, %c0_1, %c0_2] : memref<2x8x8x26xf32, #tpu.memory_space<vmem>>, vector<2x8x8x26xf32>
    %c0_3 = arith.constant 0 : index
    %c0_4 = arith.constant 0 : index
    %c0_5 = arith.constant 0 : index
    %c0_6 = arith.constant 0 : index
    %1 = vector.load %arg2[%c0_3, %c0_4, %c0_5, %c0_6] : memref<2x8x8x26xf32, #tpu.memory_space<vmem>>, vector<2x8x8x26xf32>
    %2 = arith.subf %0, %1 : vector<2x8x8x26xf32>
    %3 = vector.extract_strided_slice %1 {offsets = [0, 0, 0, 2], sizes = [2, 8, 8, 1], strides = [1, 1, 1, 1]} : vector<2x8x8x26xf32> to vector<2x8x8x1xf32>
    %4 = vector.extract_strided_slice %2 {offsets = [0, 0, 0, 6], sizes = [2, 8, 8, 20], strides = [1, 1, 1, 1]} : vector<2x8x8x26xf32> to vector<2x8x8x20xf32>
    %5 = arith.mulf %4, %4 : vector<2x8x8x20xf32>
    %cst = arith.constant dense<0.000000e+00> : vector<2x8x8xf32>
    %6 = vector.multi_reduction <add>, %5, %cst [3] : vector<2x8x8x20xf32> to vector<2x8x8xf32>
    %7 = vector.shape_cast %6 : vector<2x8x8xf32> to vector<2x8x8x1xf32>
    %8 = arith.mulf %3, %7 : vector<2x8x8x1xf32>
    %9 = vector.extract_strided_slice %2 {offsets = [0, 0, 0, 0], sizes = [2, 8, 8, 1], strides = [1, 1, 1, 1]} : vector<2x8x8x26xf32> to vector<2x8x8x1xf32>
    %10 = vector.extract_strided_slice %2 {offsets = [0, 0, 0, 1], sizes = [2, 8, 8, 1], strides = [1, 1, 1, 1]} : vector<2x8x8x26xf32> to vector<2x8x8x1xf32>
    %11 = arith.mulf %9, %9 : vector<2x8x8x1xf32>
    %12 = arith.mulf %10, %10 : vector<2x8x8x1xf32>
    %13 = arith.addf %11, %12 : vector<2x8x8x1xf32>
    %14 = math.sqrt %13 : vector<2x8x8x1xf32>
    %cst_7 = arith.constant 1.250000e-01 : f32
    %15 = vector.broadcast %cst_7 : f32 to vector<2x8x8x1xf32>
    %16 = arith.mulf %14, %15 : vector<2x8x8x1xf32>
    %cst_8 = arith.constant 1.000000e+00 : f32
    %17 = vector.broadcast %cst_8 : f32 to vector<2x8x8x1xf32>
    %18 = arith.subf %17, %16 : vector<2x8x8x1xf32>
    %19 = vector.extract_strided_slice %2 {offsets = [0, 0, 0, 3], sizes = [2, 8, 8, 1], strides = [1, 1, 1, 1]} : vector<2x8x8x26xf32> to vector<2x8x8x1xf32>
    %20 = vector.extract_strided_slice %2 {offsets = [0, 0, 0, 4], sizes = [2, 8, 8, 1], strides = [1, 1, 1, 1]} : vector<2x8x8x26xf32> to vector<2x8x8x1xf32>
    %21 = arith.mulf %19, %19 : vector<2x8x8x1xf32>
    %22 = arith.mulf %20, %20 : vector<2x8x8x1xf32>
    %23 = arith.addf %21, %22 : vector<2x8x8x1xf32>
    %24 = math.sqrt %23 : vector<2x8x8x1xf32>
    %cst_9 = arith.constant 1.250000e-01 : f32
    %25 = vector.broadcast %cst_9 : f32 to vector<2x8x8x1xf32>
    %26 = arith.mulf %24, %25 : vector<2x8x8x1xf32>
    %cst_10 = arith.constant 1.000000e+00 : f32
    %27 = vector.broadcast %cst_10 : f32 to vector<2x8x8x1xf32>
    %28 = arith.subf %27, %26 : vector<2x8x8x1xf32>
    %29 = arith.maximumf %18, %28 : vector<2x8x8x1xf32>
    %cst_11 = arith.constant 0.000000e+00 : f32
    %30 = vector.broadcast %cst_11 : f32 to vector<2x8x8x1xf32>
    %cst_12 = arith.constant 0.000000e+00 : f32
    %31 = vector.broadcast %cst_12 : f32 to vector<2x8x8x1xf32>
    %32 = vector.extract_strided_slice %0 {offsets = [0, 0, 0, 2], sizes = [2, 8, 8, 1], strides = [1, 1, 1, 1]} : vector<2x8x8x26xf32> to vector<2x8x8x1xf32>
    %33 = vector.extract_strided_slice %1 {offsets = [0, 0, 0, 2], sizes = [2, 8, 8, 1], strides = [1, 1, 1, 1]} : vector<2x8x8x26xf32> to vector<2x8x8x1xf32>
    %34 = arith.mulf %32, %32 : vector<2x8x8x1xf32>
    %35 = arith.addf %31, %34 : vector<2x8x8x1xf32>
    %36 = arith.cmpf oge, %18, %29 : vector<2x8x8x1xf32>
    %cst_13 = arith.constant 1.000000e+00 : f32
    %37 = vector.broadcast %cst_13 : f32 to vector<2x8x8x1xf32>
    %38 = arith.subf %37, %30 : vector<2x8x8x1xf32>
    %cst_14 = arith.constant 0.000000e+00 : f32
    %39 = vector.broadcast %cst_14 : f32 to vector<2x8x8x1xf32>
    %40 = arith.select %36, %38, %39 : vector<2x8x8x1xi1>, vector<2x8x8x1xf32>
    %41 = arith.addf %30, %40 : vector<2x8x8x1xf32>
    %42 = arith.mulf %40, %33 : vector<2x8x8x1xf32>
    %43 = arith.subf %32, %18 : vector<2x8x8x1xf32>
    %cst_15 = arith.constant 5.000000e+00 : f32
    %44 = vector.broadcast %cst_15 : f32 to vector<2x8x8x1xf32>
    %45 = arith.mulf %44, %42 : vector<2x8x8x1xf32>
    %46 = arith.mulf %45, %13 : vector<2x8x8x1xf32>
    %47 = arith.addf %8, %46 : vector<2x8x8x1xf32>
    %cst_16 = arith.constant 2.000000e+00 : f32
    %48 = vector.broadcast %cst_16 : f32 to vector<2x8x8x1xf32>
    %49 = arith.mulf %48, %42 : vector<2x8x8x1xf32>
    %50 = arith.mulf %49, %43 : vector<2x8x8x1xf32>
    %51 = arith.mulf %50, %43 : vector<2x8x8x1xf32>
    %52 = arith.addf %47, %51 : vector<2x8x8x1xf32>
    %53 = arith.subf %33, %42 : vector<2x8x8x1xf32>
    %54 = arith.mulf %53, %34 : vector<2x8x8x1xf32>
    %55 = arith.addf %52, %54 : vector<2x8x8x1xf32>
    %56 = vector.extract_strided_slice %0 {offsets = [0, 0, 0, 5], sizes = [2, 8, 8, 1], strides = [1, 1, 1, 1]} : vector<2x8x8x26xf32> to vector<2x8x8x1xf32>
    %57 = vector.extract_strided_slice %1 {offsets = [0, 0, 0, 5], sizes = [2, 8, 8, 1], strides = [1, 1, 1, 1]} : vector<2x8x8x26xf32> to vector<2x8x8x1xf32>
    %58 = arith.mulf %56, %56 : vector<2x8x8x1xf32>
    %59 = arith.addf %35, %58 : vector<2x8x8x1xf32>
    %60 = arith.cmpf oge, %28, %29 : vector<2x8x8x1xf32>
    %cst_17 = arith.constant 1.000000e+00 : f32
    %61 = vector.broadcast %cst_17 : f32 to vector<2x8x8x1xf32>
    %62 = arith.subf %61, %41 : vector<2x8x8x1xf32>
    %cst_18 = arith.constant 0.000000e+00 : f32
    %63 = vector.broadcast %cst_18 : f32 to vector<2x8x8x1xf32>
    %64 = arith.select %60, %62, %63 : vector<2x8x8x1xi1>, vector<2x8x8x1xf32>
    %65 = arith.mulf %64, %57 : vector<2x8x8x1xf32>
    %66 = arith.subf %56, %28 : vector<2x8x8x1xf32>
    %cst_19 = arith.constant 5.000000e+00 : f32
    %67 = vector.broadcast %cst_19 : f32 to vector<2x8x8x1xf32>
    %68 = arith.mulf %67, %65 : vector<2x8x8x1xf32>
    %69 = arith.mulf %68, %23 : vector<2x8x8x1xf32>
    %70 = arith.addf %55, %69 : vector<2x8x8x1xf32>
    %cst_20 = arith.constant 2.000000e+00 : f32
    %71 = vector.broadcast %cst_20 : f32 to vector<2x8x8x1xf32>
    %72 = arith.mulf %71, %65 : vector<2x8x8x1xf32>
    %73 = arith.mulf %72, %66 : vector<2x8x8x1xf32>
    %74 = arith.mulf %73, %66 : vector<2x8x8x1xf32>
    %75 = arith.addf %70, %74 : vector<2x8x8x1xf32>
    %76 = arith.subf %57, %65 : vector<2x8x8x1xf32>
    %77 = arith.mulf %76, %58 : vector<2x8x8x1xf32>
    %78 = arith.addf %75, %77 : vector<2x8x8x1xf32>
    %cst_21 = arith.constant 1.000000e+00 : f32
    %79 = vector.broadcast %cst_21 : f32 to vector<2x8x8x1xf32>
    %80 = arith.subf %79, %3 : vector<2x8x8x1xf32>
    %cst_22 = arith.constant 5.000000e-01 : f32
    %81 = vector.broadcast %cst_22 : f32 to vector<2x8x8x1xf32>
    %82 = arith.mulf %81, %80 : vector<2x8x8x1xf32>
    %83 = arith.mulf %82, %59 : vector<2x8x8x1xf32>
    %84 = arith.addf %78, %83 : vector<2x8x8x1xf32>
    %85 = vector.shape_cast %84 : vector<2x8x8x1xf32> to vector<1x2x8x8x1xf32>
    %cst_23 = arith.constant dense<0.000000e+00> : vector<1xf32>
    %86 = vector.multi_reduction <add>, %85, %cst_23 [1, 2, 3, 4] : vector<1x2x8x8x1xf32> to vector<1xf32>
    %87 = vector.shape_cast %86 : vector<1xf32> to vector<1x1x1x1x1xf32>
    %88 = vector.extract %87[0, 0, 0, 0, 0] : f32 from vector<1x1x1x1x1xf32>
    %89 = vector.broadcast %88 : f32 to vector<1x8x128xf32>
    %c0_24 = arith.constant 0 : index
    %c0_25 = arith.constant 0 : index
    %c0_26 = arith.constant 0 : index
    %90 = vector.load %arg3[%c0_24, %c0_25, %c0_26] : memref<1x8x128xf32, #tpu.memory_space<vmem>>, vector<1x8x128xf32>
    tpu.vector_store %arg3[%c0_24, %c0_25, %c0_26], %89 {strides = array<i32>} : memref<1x8x128xf32, #tpu.memory_space<vmem>>, vector<1x8x128xf32>,
    return
  }
  func.func @transform_0(%arg0: i32) -> (i32, i32, i32, i32) {
    %c0_i32 = arith.constant 0 : i32
    %c0_i32_0 = arith.constant 0 : i32
    %c0_i32_1 = arith.constant 0 : i32
    %c0_i32_2 = arith.constant 0 : i32
    return %arg0, %c0_i32, %c0_i32_0, %c0_i32_1 : i32, i32, i32, i32
  }
  func.func @transform_1(%arg0: i32) -> (i32, i32, i32, i32) {
    %c0_i32 = arith.constant 0 : i32
    %c0_i32_0 = arith.constant 0 : i32
    %c0_i32_1 = arith.constant 0 : i32
    %c0_i32_2 = arith.constant 0 : i32
    return %arg0, %c0_i32, %c0_i32_0, %c0_i32_1 : i32, i32, i32, i32
  }
  func.func @transform_2(%arg0: i32) -> (i32, i32, i32) {
    %c0_i32 = arith.constant 0 : i32
    %c0_i32_0 = arith.constant 0 : i32
    %c0_i32_1 = arith.constant 0 : i32
    return %arg0, %c0_i32, %c0_i32_0 : i32, i32, i32
  }
}

</mosaic_0001>

<bundles_post_ra>
// kernel: tpu_custom_call.1
= control target key start
LH: loop header
LB: loop body
LE: loop exit
PB: predicated region body
PF: predicated region fallthrough
CT: control target
= control target key end

     0   :  { %7 = vsyncpa [#allocation3], 0  ;;  %s4168_s0 = inlined_call_operand.hbm [shape: f32[2,8,8,26], index: 0, kind: input, shape index: {}]   ;;  %s4169_s1 = inlined_call_operand.hbm [shape: f32[2,8,8,26], index: 1, kind: input, shape index: {}]   ;;  %s4170_s2 = inlined_call_operand.hbm [shape: f32[1,8,128], index: 2, kind: output, shape index: {}]  }
   0x1   :  { %8 = vsyncpa [#allocation6], 0 }
   0x2   :  { %9 = vsyncpa [#allocation4], 0  ;;  %s14_s11 = sshll.u32 %s4168_s0, 4  ;;  %s2279_s12 = smov [#allocation2]   ;;  %s15_s11 = int_to_ptr.hbm [resolvable:$true] %s14_s11 }
   0x3   :  { %s16_s13 = sshll.u32 %s2279_s12, 4  ;;  %s27_s16 = sshll.u32 %s4169_s1, 4  ;;  %s17_s13 = int_to_ptr.vmem [resolvable:$true] %s16_s13  ;;  %s28_s16 = int_to_ptr.hbm [resolvable:$true] %s27_s16 }
   0x4   :  { %s2280_s17 = smov 128   ;;  %s2281_s18 = smov 8  }
   0x5   :  { %22 = dma.hbm_to_vmem [thread:$0]  %s15_s11, 2048, %s17_s13, [#allocation3], %s2280_s17, %s2280_s17, %s2281_s18  }
   0x6   :  { %s2282_s19 = smov [#allocation5]  }
   0x7   :  { %s29_s20 = sshll.u32 %s2282_s19, 4  ;;  %s30_s20 = int_to_ptr.vmem [resolvable:$true] %s29_s20 }
   0x8   :  { %35 = dma.hbm_to_vmem [thread:$0]  %s28_s16, 2048, %s30_s20, [#allocation6], %s2280_s17, %s2280_s17, %s2281_s18  }
   0x9   :  { %2273 = dma.done.wait [#allocation3], 2048  }
   0xa   :  { %2274 = vsyncadd [#allocation3], 4294965248 }
   0xb   :  { %2275 = dma.done.wait [#allocation6], 2048  }
   0xc   :  { %2276 = vsyncadd [#allocation6], 4294965248  ;;  %v46_v0 = vld [vmem:[#allocation2 + $0x10] sm:$0xff]  ;;  %v44_v2 = vld [vmem:[#allocation2] sm:$0xff]  ;;  %s2283_s0 = smov 122   ;;  %vm172_vm0 = vcmask 162816  }
   0xd   :  { %v2312_v1 = vld [vmem:[#allocation5 + $0x10] sm:$0xff]  ;;  %v2315_v4 = vld [vmem:[#allocation5] sm:$0xff]  ;;  %v47_v6 = vld [vmem:[#allocation2 + $0x18] sm:$0xff]  ;;  %s2284_s1 = smov 127   ;;  %s2285_s21 = smov 125  }
   0xe   :  { %v78_v3 = vsub.f32 %v46_v0, %v2312_v1  ;;  %v76_v5 = vsub.f32 %v44_v2, %v2315_v4  ;;  %v2318_v7 = vld [vmem:[#allocation5 + $0x18] sm:$0xff]  ;;  %v45_v9 = vld [vmem:[#allocation2 + $0x8] sm:$0xff]  ;;  %v48_v13 = vld [vmem:[#allocation2 + $0x20] sm:$0xff]  ;;  %s2286_s22 = smov 126   ;;  %s2287_s23 = smov 2  }
   0xf   :  { %v2322_v10 = vld [vmem:[#allocation5 + $0x8] sm:$0xff]  ;;  %v79_v12 = vsub.f32 %v47_v6, %v2318_v7  ;;  %v2329_v14 = vld [vmem:[#allocation5 + $0x20] sm:$0xff]  ;;  %v51_v20 = vld [vmem:[#allocation2 + $0x38] sm:$0xff]  ;;  %s2289_s24 = smov 3   ;;  %s2111_s27 = sshll.u32 %s4170_s2, 4  ;;  %s2112_s27 = int_to_ptr.hbm [resolvable:$true] %s2111_s27 }
  0x10   :  { %v2320_v8 = vmul.f32 %v78_v3, %v78_v3  ;;  %v2324_v11 = vmul.f32 %v76_v5, %v76_v5  ;;  %v77_v15 = vsub.f32 %v45_v9, %v2322_v10  ;;  %v80_v16 = vsub.f32 %v48_v13, %v2329_v14  ;;  %v2341_v21 = vld [vmem:[#allocation5 + $0x38] sm:$0xff]  ;;  %v50_v22 = vld [vmem:[#allocation2 + $0x30] sm:$0xff]  ;;  %v49_v26 = vld [vmem:[#allocation2 + $0x28] sm:$0xff]  ;;  %s2290_s28 = smov [#allocation7]  }
  0x11   :  { %v2337_v18 = vmul.f32 %v79_v12, %v79_v12  ;;  %v2345_v23 = vld [vmem:[#allocation5 + $0x30] sm:$0xff]  ;;  %v83_v24 = vsub.f32 %v51_v20, %v2341_v21  ;;  %v2353_v27 = vld [vmem:[#allocation5 + $0x28] sm:$0xff]  ;;  %v52_v29 = vld [vmem:[#allocation2 + $0x40] sm:$0xff]  ;;  %s2109_s29 = sshll.u32 %s2290_s28, 4  ;;  %s2110_s29 = int_to_ptr.vmem [resolvable:$true] %s2109_s29 }
  0x12   :  { %128 = vrot.lane.b32.xlu1 %v2320_v8, %s2283_s0  ;;  %124 = vrot.lane.b32.xlu0 %v2324_v11, %s2283_s0  ;;  %v2335_v17 = vmul.f32 %v80_v16, %v80_v16  ;;  %v2339_v19 = vmul.f32 %v77_v15, %v77_v15  ;;  %v82_v25 = vsub.f32 %v50_v22, %v2345_v23  ;;  %v2356_v30 = vld [vmem:[#allocation5 + $0x40] sm:$0xff]  ;;  %v54_v34 = vld [vmem:[#allocation2 + $0x50] sm:$0xff]  ;;  %v53_v36 = vld [vmem:[#allocation2 + $0x48] sm:$0xff] }
  0x13   :  { %v81_v28 = vsub.f32 %v49_v26, %v2353_v27  ;;  %v2358_v31 = vmul.f32 %v83_v24, %v83_v24  ;;  %v2364_v35 = vld [vmem:[#allocation5 + $0x50] sm:$0xff]  ;;  %v2366_v37 = vld [vmem:[#allocation5 + $0x48] sm:$0xff]  ;;  %v84_v38 = vsub.f32 %v52_v29, %v2356_v30  ;;  %v55_v42 = vld [vmem:[#allocation2 + $0x58] sm:$0xff] }
  0x14   :  { %132 = vrot.lane.b32.xlu2 %v2335_v17, %s2283_s0  ;;  %v2362_v33 = vmul.f32 %v82_v25, %v82_v25  ;;  %v86_v39 = vsub.f32 %v54_v34, %v2364_v35  ;;  %v85_v40 = vsub.f32 %v53_v36, %v2366_v37  ;;  %v2379_v43 = vld [vmem:[#allocation5 + $0x58] sm:$0xff]  ;;  %v57_v46 = vld [vmem:[#allocation2 + $0x68] sm:$0xff]  ;;  %v56_v48 = vld [vmem:[#allocation2 + $0x60] sm:$0xff] }
  0x15   :  { %v2360_v32 = vmul.f32 %v81_v28, %v81_v28  ;;  %v2377_v41 = vmul.f32 %v84_v38, %v84_v38  ;;  %v2385_v47 = vld [vmem:[#allocation5 + $0x68] sm:$0xff]  ;;  %v2387_v49 = vld [vmem:[#allocation5 + $0x60] sm:$0xff]  ;;  %v87_v50 = vsub.f32 %v55_v42, %v2379_v43  ;;  %v58_v54 = vld [vmem:[#allocation2 + $0x70] sm:$0xff] }
  0x16   :  { %v2381_v44 = vmul.f32 %v86_v39, %v86_v39  ;;  %v2383_v45 = vmul.f32 %v85_v40, %v85_v40  ;;  %v89_v51 = vsub.f32 %v57_v46, %v2385_v47  ;;  %v88_v52 = vsub.f32 %v56_v48, %v2387_v49  ;;  %v2400_v55 = vld [vmem:[#allocation5 + $0x70] sm:$0xff]  ;;  %v59_v58 = vld [vmem:[#allocation2 + $0x78] sm:$0xff] }
  0x17   :  { %v2398_v53 = vmul.f32 %v87_v50, %v87_v50  ;;  %v2406_v59 = vld [vmem:[#allocation5 + $0x78] sm:$0xff]  ;;  %v90_v60 = vsub.f32 %v58_v54, %v2400_v55 }
  0x18   :  { %v2402_v56 = vmul.f32 %v89_v51, %v89_v51  ;;  %v2404_v57 = vmul.f32 %v88_v52, %v88_v52  ;;  %v91_v61 = vsub.f32 %v59_v58, %v2406_v59 }
  0x19   :  { %v2416_v62 = vmul.f32 %v90_v60, %v90_v60 }
  0x1a   :  { %130 = vrot.lane.b32.xlu1 %v2337_v18, %s2283_s0  ;;  %126 = vrot.lane.b32.xlu0 %v2339_v19, %s2283_s0  ;;  %v2418_v63 = vmul.f32 %v91_v61, %v91_v61 }
  0x1c   :  { %134 = vrot.lane.b32.xlu2 %v2360_v32, %s2283_s0 }
  0x22   :  { %138 = vrot.lane.b32.xlu1 %v2358_v31, %s2283_s0  ;;  %136 = vrot.lane.b32.xlu0 %v2362_v33, %s2283_s0 }
  0x24   :  { %140 = vrot.lane.b32.xlu2 %v2377_v41, %s2283_s0 }
  0x2a   :  { %144 = vrot.lane.b32.xlu1 %v2381_v44, %s2283_s0  ;;  %142 = vrot.lane.b32.xlu0 %v2383_v45, %s2283_s0 }
  0x2c   :  { %146 = vrot.lane.b32.xlu2 %v2398_v53, %s2283_s0 }
  0x32   :  { %150 = vrot.lane.b32.xlu1 %v2402_v56, %s2283_s0  ;;  %148 = vrot.lane.b32.xlu0 %v2404_v57, %s2283_s0 }
  0x34   :  { %152 = vrot.lane.b32.xlu2 %v2416_v62, %s2283_s0 }
  0x3a   :  { %154 = vrot.lane.b32.xlu0 %v2418_v63, %s2283_s0 }
  0x6e   :  { %v133_v6 = vpop.permute.xlu2 %132 }
  0x6f   :  { %v185_v12 = vsel %vm172_vm0, %v133_v6, 0.0 }
  0x76   :  { %v135_v16 = vpop.permute.xlu2 %134 }
  0x77   :  { %v188_v29 = vsel %vm172_vm0, %v135_v16, 0.0 }
  0x7e   :  { %v141_v38 = vpop.permute.xlu2 %140 }
  0x7f   :  { %v197_v42 = vsel %vm172_vm0, %v141_v38, 0.0 }
  0x84   :  { %v129_v0 = vpop.permute.xlu1 %128  ;;  %v125_v2 = vpop.permute.xlu0 %124 }
  0x85   :  { %v179_v3 = vsel %vm172_vm0, %v129_v0, 0.0  ;;  %v173_v5 = vsel %vm172_vm0, %v125_v2, 0.0 }
  0x86   :  { %180 = vadd.xlane.f32.xlu0 %v179_v3  ;;  %174 = vadd.xlane.f32.xlu1 %v173_v5  ;;  %v147_v51 = vpop.permute.xlu2 %146 }
  0x87   :  { %v206_v52 = vsel %vm172_vm0, %v147_v51, 0.0 }
  0x8c   :  { %v131_v9 = vpop.permute.xlu1 %130  ;;  %v127_v13 = vpop.permute.xlu0 %126 }
  0x8d   :  { %v176_v15 = vsel %vm172_vm0, %v127_v13, 0.0  ;;  %v182_v25 = vsel %vm172_vm0, %v131_v9, 0.0 }
  0x8e   :  { %186 = vadd.xlane.f32.xlu1 %v185_v12  ;;  %177 = vadd.xlane.f32.xlu2 %v176_v15  ;;  %v153_v60 = vpop.permute.xlu2 %152 }
  0x8f   :  { %v215_v61 = vsel %vm172_vm0, %v153_v60, 0.0 }
  0x94   :  { %v139_v20 = vpop.permute.xlu1 %138  ;;  %v137_v22 = vpop.permute.xlu0 %136 }
  0x95   :  { %v194_v24 = vsel %vm172_vm0, %v139_v20, 0.0  ;;  %v191_v26 = vsel %vm172_vm0, %v137_v22, 0.0 }
  0x96   :  { %195 = vadd.xlane.f32.xlu1 %v194_v24  ;;  %183 = vadd.xlane.f32.xlu2 %v182_v25 }
  0x97   :  { %192 = vadd.xlane.f32.xlu0 %v191_v26 }
  0x9c   :  { %v145_v28 = vpop.permute.xlu1 %144  ;;  %v143_v34 = vpop.permute.xlu0 %142 }
  0x9d   :  { %v203_v36 = vsel %vm172_vm0, %v145_v28, 0.0  ;;  %v200_v39 = vsel %vm172_vm0, %v143_v34, 0.0 }
  0x9e   :  { %204 = vadd.xlane.f32.xlu1 %v203_v36  ;;  %189 = vadd.xlane.f32.xlu2 %v188_v29 }
  0x9f   :  { %201 = vadd.xlane.f32.xlu0 %v200_v39 }
  0xa4   :  { %v151_v40 = vpop.permute.xlu1 %150  ;;  %v149_v46 = vpop.permute.xlu0 %148 }
  0xa5   :  { %v212_v48 = vsel %vm172_vm0, %v151_v40, 0.0  ;;  %v209_v50 = vsel %vm172_vm0, %v149_v46, 0.0 }
  0xa6   :  { %213 = vadd.xlane.f32.xlu1 %v212_v48  ;;  %198 = vadd.xlane.f32.xlu2 %v197_v42 }
  0xa7   :  { %210 = vadd.xlane.f32.xlu0 %v209_v50 }
  0xac   :  { %v155_v54 = vpop.permute.xlu0 %154 }
  0xad   :  { %v218_v58 = vsel %vm172_vm0, %v155_v54, 0.0 }
  0xae   :  { %207 = vadd.xlane.f32.xlu2 %v206_v52 }
  0xaf   :  { %219 = vadd.xlane.f32.xlu0 %v218_v58 }
  0xb6   :  { %216 = vadd.xlane.f32.xlu2 %v215_v61 }
  0xbf   :  { %237 = vrot.lane.b32.xlu1 %v2324_v11, %s2284_s1 }
  0xc3   :  { %241 = vrot.lane.b32.xlu0 %v2320_v8, %s2284_s1 }
  0xc7   :  { %243 = vrot.lane.b32.xlu1 %v2337_v18, %s2284_s1 }
  0xcb   :  { %245 = vrot.lane.b32.xlu0 %v2335_v17, %s2284_s1 }
  0xce   :  { %239 = vrot.lane.b32.xlu2 %v2339_v19, %s2284_s1 }
  0xcf   :  { %249 = vrot.lane.b32.xlu1 %v2362_v33, %s2284_s1 }
  0xd3   :  { %251 = vrot.lane.b32.xlu0 %v2358_v31, %s2284_s1 }
  0xd6   :  { %247 = vrot.lane.b32.xlu2 %v2360_v32, %s2284_s1 }
  0xd7   :  { %255 = vrot.lane.b32.xlu1 %v2383_v45, %s2284_s1 }
  0xdb   :  { %257 = vrot.lane.b32.xlu0 %v2381_v44, %s2284_s1 }
  0xde   :  { %253 = vrot.lane.b32.xlu2 %v2377_v41, %s2284_s1 }
  0xdf   :  { %261 = vrot.lane.b32.xlu1 %v2404_v57, %s2284_s1 }
  0xe3   :  { %263 = vrot.lane.b32.xlu0 %v2402_v56, %s2284_s1 }
  0xe6   :  { %259 = vrot.lane.b32.xlu2 %v2398_v53, %s2284_s1 }
  0xe7   :  { %267 = vrot.lane.b32.xlu1 %v2418_v63, %s2284_s1 }
  0xee   :  { %265 = vrot.lane.b32.xlu2 %v2416_v62, %s2284_s1 }
  0xf9   :  { %v2472_v0 = vpop.xlane.xlu1 %174  ;;  %v2476_v3 = vpop.xlane.xlu0 %180 }
  0xfa   :  { %4274 = vst [vmem:[#allocation11_spill] sm:$0xff] %v2472_v0 }
  0xfb   :  { %4276 = vst [vmem:[#allocation13_spill] sm:$0xff] %v2476_v3 }
 0x101   :  { %v2474_v2 = vpop.xlane.xlu2 %177  ;;  %v2480_v6 = vpop.xlane.xlu1 %186 }
 0x102   :  { %4275 = vst [vmem:[#allocation12_spill] sm:$0xff] %v2474_v2 }
 0x103   :  { %4278 = vst [vmem:[#allocation15_spill] sm:$0xff] %v2480_v6 }
 0x109   :  { %v2478_v5 = vpop.xlane.xlu2 %183  ;;  %v2486_v13 = vpop.xlane.xlu1 %195 }
 0x10a   :  { %4277 = vst [vmem:[#allocation14_spill] sm:$0xff] %v2478_v5  ;;  %v2482_v9 = vpop.xlane.xlu0 %192 }
 0x10b   :  { %4279 = vst [vmem:[#allocation16_spill] sm:$0xff] %v2482_v9 }
 0x10c   :  { %4281 = vst [vmem:[#allocation18_spill] sm:$0xff] %v2486_v13 }
 0x111   :  { %v2484_v12 = vpop.xlane.xlu2 %189  ;;  %v2492_v20 = vpop.xlane.xlu1 %204 }
 0x112   :  { %4280 = vst [vmem:[#allocation17_spill] sm:$0xff] %v2484_v12  ;;  %v2488_v15 = vpop.xlane.xlu0 %201 }
 0x113   :  { %4282 = vst [vmem:[#allocation19_spill] sm:$0xff] %v2488_v15 }
 0x114   :  { %4284 = vst [vmem:[#allocation21_spill] sm:$0xff] %v2492_v20 }
 0x119   :  { %v2490_v16 = vpop.xlane.xlu2 %198  ;;  %v2498_v25 = vpop.xlane.xlu1 %213 }
 0x11a   :  { %4283 = vst [vmem:[#allocation20_spill] sm:$0xff] %v2490_v16  ;;  %v2496_v24 = vpop.xlane.xlu0 %210 }
 0x11b   :  { %4286 = vst [vmem:[#allocation23_spill] sm:$0xff] %v2496_v24 }
 0x11c   :  { %4287 = vst [vmem:[#allocation24_spill] sm:$0xff] %v2498_v25 }
 0x121   :  { %v2494_v22 = vpop.xlane.xlu2 %207 }
 0x122   :  { %4285 = vst [vmem:[#allocation22_spill] sm:$0xff] %v2494_v22  ;;  %v2502_v28 = vpop.xlane.xlu0 %219 }
 0x123   :  { %4289 = vst [vmem:[#allocation26_spill] sm:$0xff] %v2502_v28 }
 0x129   :  { %v2500_v26 = vpop.xlane.xlu2 %216 }
 0x12a   :  { %4288 = vst [vmem:[#allocation25_spill] sm:$0xff] %v2500_v26 }
 0x131   :  { %v238_v29 = vpop.permute.xlu1 %237  ;;  %v240_v34 = vpop.permute.xlu2 %239 }
 0x132   :  { %v2505_v36 = vadd.f32 %v238_v29, %v2324_v11  ;;  %v2508_v38 = vadd.f32 %v240_v34, %v2339_v19 }
 0x134   :  { %4290 = vst [vmem:[#allocation27_spill] sm:$0xff] %v2505_v36  ;;  %2136 = vrsqrt.f32 %v2508_v38  ;;  %vm320_vm1 = vcmp.eq.f32.partialorder %v2508_v38, inf  ;;  %vm322_vm2 = vcmp.eq.f32.partialorder %v2508_v38, 0.0  ;;  %v323_v29 = vand.u32 2147483648, %v2508_v38 }
 0x135   :  { %4291 = vst [vmem:[#allocation28_spill] sm:$0xff] %v2508_v38  ;;  %v242_v39 = vpop.permute.xlu0 %241  ;;  %2138 = vrsqrt.f32 %v2505_v36  ;;  %vm308_vm3 = vcmp.eq.f32.partialorder %v2505_v36, inf  ;;  %vm310_vm4 = vcmp.eq.f32.partialorder %v2505_v36, 0.0 }
 0x136   :  { %v2513_v40 = vadd.f32 %v242_v39, %v2320_v8 }
 0x138   :  { %4292 = vst [vmem:[#allocation29_spill] sm:$0xff] %v2513_v40  ;;  %2140 = vrsqrt.f32 %v2513_v40  ;;  %vm332_vm5 = vcmp.eq.f32.partialorder %v2513_v40, inf  ;;  %vm334_vm6 = vcmp.eq.f32.partialorder %v2513_v40, 0.0  ;;  %v335_v15 = vand.u32 2147483648, %v2513_v40 }
 0x139   :  { %v244_v42 = vpop.permute.xlu1 %243  ;;  %v248_v46 = vpop.permute.xlu2 %247 }
 0x13a   :  { %v2137_v48 = vpop.eup %2136  ;;  %v2517_v50 = vadd.f32 %v244_v42, %v2337_v18  ;;  %v2520_v11 = vadd.f32 %v248_v46, %v2360_v32 }
 0x13b   :  { %v2139_v19 = vpop.eup %2138  ;;  %v314_v51 = vmul.f32 %v2137_v48, %v2508_v38 }
 0x13c   :  { %4293 = vst [vmem:[#allocation30_spill] sm:$0xff] %v2517_v50  ;;  %v302_v52 = vmul.f32 %v2139_v19, %v2505_v36  ;;  %2142 = vrsqrt.f32 %v2517_v50  ;;  %vm344_vm7 = vcmp.eq.f32.partialorder %v2517_v50, inf  ;;  %vm346_vm8 = vcmp.eq.f32.partialorder %v2517_v50, 0.0 }
 0x13d   :  { %4294 = vst [vmem:[#allocation31_spill] sm:$0xff] %v2520_v11  ;;  %v246_v8 = vpop.permute.xlu0 %245  ;;  %v315_v54 = vmul.f32 %v2137_v48, %v314_v51  ;;  %2144 = vrsqrt.f32 %v2520_v11  ;;  %vm368_vm9 = vcmp.eq.f32.partialorder %v2520_v11, inf  ;;  %vm370_vm10 = vcmp.eq.f32.partialorder %v2520_v11, 0.0 }
 0x13e   :  { %v2141_v58 = vpop.eup %2140  ;;  %v2527_v60 = vadd.f32 %v246_v8, %v2335_v17  ;;  %v303_v18 = vmul.f32 %v2139_v19, %v302_v52 }
 0x13f   :  { %v316_v61 = vmul.f32 0.5, %v315_v54  ;;  %v326_v32 = vmul.f32 %v2141_v58, %v2513_v40  ;;  %v311_v54 = vand.u32 2147483648, %v2505_v36 }
 0x140   :  { %4295 = vst [vmem:[#allocation32_spill] sm:$0xff] %v2527_v60  ;;  %v304_v34 = vmul.f32 0.5, %v303_v18  ;;  %2146 = vrsqrt.f32 %v2527_v60  ;;  %vm356_vm11 = vcmp.eq.f32.partialorder %v2527_v60, inf  ;;  %vm358_vm12 = vcmp.eq.f32.partialorder %v2527_v60, 0.0 }
 0x141   :  { %v250_v39 = vpop.permute.xlu1 %249  ;;  %v254_v42 = vpop.permute.xlu2 %253  ;;  %v317_v46 = vsub.f32 1.5, %v316_v61  ;;  %v327_v17 = vmul.f32 %v2141_v58, %v326_v32 }
 0x142   :  { %v2143_v51 = vpop.eup %2142  ;;  %v2537_v52 = vadd.f32 %v250_v39, %v2362_v33  ;;  %v305_v8 = vsub.f32 1.5, %v304_v34  ;;  %v2544_v22 = vadd.f32 %v254_v42, %v2377_v41  ;;  %v347_v41 = vand.u32 2147483648, %v2517_v50 }
 0x143   :  { %v2145_v18 = vpop.eup %2144  ;;  %v318_v25 = vmul.f32 %v2137_v48, %v317_v46  ;;  %v328_v24 = vmul.f32 0.5, %v327_v17  ;;  %v338_v61 = vmul.f32 %v2143_v51, %v2517_v50 }
 0x144   :  { %4296 = vst [vmem:[#allocation33_spill] sm:$0xff] %v2537_v52  ;;  %v306_v32 = vmul.f32 %v2139_v19, %v305_v8  ;;  %v362_v20 = vmul.f32 %v2145_v18, %v2520_v11  ;;  %2148 = vrsqrt.f32 %v2537_v52  ;;  %vm380_vm13 = vcmp.eq.f32.partialorder %v2537_v52, inf }
 0x145   :  { %4297 = vst [vmem:[#allocation34_spill] sm:$0xff] %v2544_v22  ;;  %v252_v33 = vpop.permute.xlu0 %251  ;;  %v319_v34 = vmul.f32 %v318_v25, %v2508_v38  ;;  %v329_v39 = vsub.f32 1.5, %v328_v24  ;;  %v339_v48 = vmul.f32 %v2143_v51, %v338_v61  ;;  %2150 = vrsqrt.f32 %v2544_v22 }
 0x146   :  { %v2147_v46 = vpop.eup %2146  ;;  %v307_v17 = vmul.f32 %v306_v32, %v2505_v36  ;;  %v363_v42 = vmul.f32 %v2145_v18, %v362_v20  ;;  %vm382_vm14 = vcmp.eq.f32.partialorder %v2537_v52, 0.0  ;;  %vm404_vm15 = vcmp.eq.f32.partialorder %v2544_v22, inf }
 0x147   :  { %v321_v19 = vsel %vm320_vm1, %v2508_v38, %v319_v34  ;;  %v330_v8 = vmul.f32 %v2141_v58, %v329_v39  ;;  %v340_v16 = vmul.f32 0.5, %v339_v48  ;;  %v350_v24 = vmul.f32 %v2147_v46, %v2527_v60 }
 0x148   :  { %v324_v25 = vsel %vm322_vm2, %v323_v29, %v321_v19  ;;  %v309_v61 = vsel %vm308_vm3, %v2505_v36, %v307_v17  ;;  %v364_v32 = vmul.f32 0.5, %v363_v42  ;;  %vm406_vm0 = vcmp.eq.f32.partialorder %v2544_v22, 0.0 }
 0x149   :  { %v256_v20 = vpop.permute.xlu1 %255  ;;  %v494_v13 = vmul.f32 0.125, %v324_v25  ;;  %v312_v58 = vsel %vm310_vm4, %v311_v54, %v309_v61  ;;  %v331_v34 = vmul.f32 %v330_v8, %v2513_v40  ;;  %v341_v39 = vsub.f32 1.5, %v340_v16  ;;  %v260_v61 = vpop.permute.xlu2 %259 }
 0x14a   :  { %v2149_v48 = vpop.eup %2148  ;;  %v493_v9 = vmul.f32 0.125, %v312_v58  ;;  %v365_v12 = vsub.f32 1.5, %v364_v32  ;;  %v351_v19 = vmul.f32 %v2147_v46, %v350_v24  ;;  %v371_v58 = vand.u32 2147483648, %v2520_v11 }
 0x14b   :  { %v2569_v29 = vsub.f32 1.0, %v494_v13  ;;  %v333_v17 = vsel %vm332_vm5, %v2513_v40, %v331_v34  ;;  %v342_v42 = vmul.f32 %v2143_v51, %v341_v39  ;;  %v374_v8 = vmul.f32 %v2149_v48, %v2537_v52  ;;  %v2151_v24 = vpop.eup %2150 }
 0x14c   :  { %v2574_v25 = vsub.f32 1.0, %v493_v9  ;;  %v336_v16 = vsel %vm334_vm6, %v335_v15, %v333_v17  ;;  %v366_v54 = vmul.f32 %v2145_v18, %v365_v12  ;;  %v352_v51 = vmul.f32 0.5, %v351_v19 }
 0x14d   :  { %4298 = vst [vmem:[#allocation35_spill] sm:$0xff] %v2569_v29  ;;  %543 = vrot.lane.b32.xlu2 %v2569_v29, %s2285_s21  ;;  %v495_v13 = vmul.f32 0.125, %v336_v16  ;;  %v343_v32 = vmul.f32 %v342_v42, %v2517_v50  ;;  %v2584_v9 = vadd.f32 %v252_v33, %v2358_v31  ;;  %v258_v34 = vpop.permute.xlu0 %257  ;;  %v375_v15 = vmul.f32 %v2149_v48, %v374_v8 }
 0x14e   :  { %4299 = vst [vmem:[#allocation36_spill] sm:$0xff] %v2574_v25  ;;  %541 = vrot.lane.b32.xlu0 %v2574_v25, %s2285_s21  ;;  %v367_v12 = vmul.f32 %v366_v54, %v2520_v11  ;;  %v353_v17 = vsub.f32 1.5, %v352_v51  ;;  %v398_v42 = vmul.f32 %v2151_v24, %v2544_v22  ;;  %v2597_v31 = vadd.f32 %v256_v20, %v2383_v45 }
 0x14f   :  { %4300 = vst [vmem:[#allocation37_spill] sm:$0xff] %v2584_v9  ;;  %v2590_v18 = vsub.f32 1.0, %v495_v13  ;;  %v345_v39 = vsel %vm344_vm7, %v2517_v50, %v343_v32  ;;  %v376_v16 = vmul.f32 0.5, %v375_v15  ;;  %2152 = vrsqrt.f32 %v2584_v9 }
 0x150   :  { %4302 = vst [vmem:[#allocation39_spill] sm:$0xff] %v2597_v31  ;;  %v348_v33 = vsel %vm346_vm8, %v347_v41, %v345_v39  ;;  %v369_v19 = vsel %vm368_vm9, %v2520_v11, %v367_v12  ;;  %v354_v32 = vmul.f32 %v2147_v46, %v353_v17  ;;  %v399_v51 = vmul.f32 %v2151_v24, %v398_v42 }
 0x151   :  { %4301 = vst [vmem:[#allocation38_spill] sm:$0xff] %v2590_v18  ;;  %545 = vrot.lane.b32.xlu1 %v2590_v18, %s2285_s21  ;;  %v262_v54 = vpop.permute.xlu1 %261  ;;  %v496_v8 = vmul.f32 0.125, %v348_v33  ;;  %v372_v13 = vsel %vm370_vm10, %v371_v58, %v369_v19  ;;  %v359_v41 = vand.u32 2147483648, %v2527_v60  ;;  %v377_v20 = vsub.f32 1.5, %v376_v16 }
 0x152   :  { %v498_v45 = vmul.f32 0.125, %v372_v13  ;;  %v355_v12 = vmul.f32 %v354_v32, %v2527_v60  ;;  %v400_v15 = vmul.f32 0.5, %v399_v51  ;;  %v2615_v33 = vadd.f32 %v260_v61, %v2398_v53  ;;  %v266_v61 = vpop.permute.xlu2 %265 }
 0x153   :  { %v2610_v39 = vsub.f32 1.0, %v496_v8  ;;  %v378_v6 = vmul.f32 %v2149_v48, %v377_v20  ;;  %2154 = vrsqrt.f32 %v2597_v31  ;;  %v2625_v42 = vadd.f32 %v258_v34, %v2381_v44 }
 0x154   :  { %4304 = vst [vmem:[#allocation41_spill] sm:$0xff] %v2615_v33  ;;  %v2618_v46 = vsub.f32 1.0, %v498_v45  ;;  %v357_v58 = vsel %vm356_vm11, %v2527_v60, %v355_v12  ;;  %v401_v17 = vsub.f32 1.5, %v400_v15  ;;  %v383_v16 = vand.u32 2147483648, %v2537_v52 }
 0x155   :  { %4303 = vst [vmem:[#allocation40_spill] sm:$0xff] %v2610_v39  ;;  %v360_v53 = vsel %vm358_vm12, %v359_v41, %v357_v58  ;;  %v379_v48 = vmul.f32 %v378_v6, %v2537_v52  ;;  %v264_v13 = vpop.permute.xlu0 %263  ;;  %v407_v34 = vand.u32 2147483648, %v2544_v22  ;;  %2156 = vrsqrt.f32 %v2615_v33  ;;  %v2153_v6 = vpop.eup %2152 }
 0x156   :  { %4305 = vst [vmem:[#allocation42_spill] sm:$0xff] %v2618_v46  ;;  %547 = vrot.lane.b32.xlu0 %v2610_v39, %s2285_s21  ;;  %v497_v19 = vmul.f32 0.125, %v360_v53  ;;  %v402_v8 = vmul.f32 %v2151_v24, %v401_v17  ;;  %v2642_v32 = vadd.f32 %v262_v54, %v2404_v57  ;;  %v2650_v41 = vadd.f32 %v266_v61, %v2416_v62 }
 0x157   :  { %4306 = vst [vmem:[#allocation43_spill] sm:$0xff] %v2625_v42  ;;  %v381_v44 = vsel %vm380_vm13, %v2537_v52, %v379_v48  ;;  %v386_v12 = vmul.f32 %v2153_v6, %v2584_v9  ;;  %2158 = vrsqrt.f32 %v2625_v42  ;;  %v2655_v57 = vadd.f32 %v264_v13, %v2402_v56 }
 0x158   :  { %4307 = vst [vmem:[#allocation44_spill] sm:$0xff] %v2642_v32  ;;  %v2646_v24 = vsub.f32 1.0, %v497_v19  ;;  %v384_v51 = vsel %vm382_vm14, %v383_v16, %v381_v44  ;;  %v403_v45 = vmul.f32 %v402_v8, %v2544_v22  ;;  %vm392_vm1 = vcmp.eq.f32.partialorder %v2584_v9, inf }
 0x159   :  { %551 = vrot.lane.b32.xlu1 %v2618_v46, %s2285_s21  ;;  %4309 = vst [vmem:[#allocation46_spill] sm:$0xff] %v2650_v41  ;;  %v499_v20 = vmul.f32 0.125, %v384_v51  ;;  %v2155_v15 = vpop.eup %2154  ;;  %v268_v54 = vpop.permute.xlu1 %267  ;;  %v387_v53 = vmul.f32 %v2153_v6, %v386_v12  ;;  %vm394_vm2 = vcmp.eq.f32.partialorder %v2584_v9, 0.0  ;;  %2160 = vrsqrt.f32 %v2642_v32 }
 0x15a   :  { %4308 = vst [vmem:[#allocation45_spill] sm:$0xff] %v2646_v24  ;;  %549 = vrot.lane.b32.xlu2 %v2646_v24, %s2285_s21  ;;  %v405_v58 = vsel %vm404_vm15, %v2544_v22, %v403_v45  ;;  %v410_v48 = vmul.f32 %v2155_v15, %v2597_v31  ;;  %v2671_v19 = vadd.f32 %v268_v54, %v2418_v63  ;;  %2162 = vrsqrt.f32 %v2650_v41 }
 0x15b   :  { %4310 = vst [vmem:[#allocation47_spill] sm:$0xff] %v2655_v57  ;;  %v2662_v17 = vsub.f32 1.0, %v499_v20  ;;  %v408_v62 = vsel %vm406_vm0, %v407_v34, %v405_v58  ;;  %v2157_v56 = vpop.eup %2156  ;;  %v388_v16 = vmul.f32 0.5, %v387_v53  ;;  %v395_v44 = vand.u32 2147483648, %v2584_v9 }
 0x15c   :  { %v501_v61 = vmul.f32 0.125, %v408_v62  ;;  %4312 = vst [vmem:[#allocation49_spill] sm:$0xff] %v2671_v19  ;;  %v411_v8 = vmul.f32 %v2155_v15, %v410_v48  ;;  %vm416_vm3 = vcmp.eq.f32.partialorder %v2597_v31, inf  ;;  %v434_v34 = vmul.f32 %v2157_v56, %v2615_v33 }
 0x15d   :  { %4311 = vst [vmem:[#allocation48_spill] sm:$0xff] %v2662_v17  ;;  %v2159_v51 = vpop.eup %2158  ;;  %v389_v45 = vsub.f32 1.5, %v388_v16  ;;  %vm418_vm4 = vcmp.eq.f32.partialorder %v2597_v31, 0.0  ;;  %v419_v63 = vand.u32 2147483648, %v2597_v31  ;;  %2164 = vrsqrt.f32 %v2655_v57 }
 0x15e   :  { %553 = vrot.lane.b32.xlu0 %v2662_v17, %s2285_s21  ;;  %v2676_v13 = vsub.f32 1.0, %v501_v61  ;;  %v412_v20 = vmul.f32 0.5, %v411_v8  ;;  %v435_v12 = vmul.f32 %v2157_v56, %v434_v34  ;;  %vm440_vm5 = vcmp.eq.f32.partialorder %v2615_v33, inf }
 0x15f   :  { %vm442_vm6 = vcmp.eq.f32.partialorder %v2615_v33, 0.0  ;;  %v422_v54 = vmul.f32 %v2159_v51, %v2625_v42  ;;  %v390_v58 = vmul.f32 %v2153_v6, %v389_v45  ;;  %v443_v53 = vand.u32 2147483648, %v2615_v33  ;;  %v2161_v48 = vpop.eup %2160 }
 0x160   :  { %4313 = vst [vmem:[#allocation50_spill] sm:$0xff] %v2676_v13  ;;  %v413_v62 = vsub.f32 1.5, %v412_v20  ;;  %2166 = vrsqrt.f32 %v2671_v19  ;;  %v436_v61 = vmul.f32 0.5, %v435_v12  ;;  %vm428_vm7 = vcmp.eq.f32.partialorder %v2625_v42, inf  ;;  %v2163_v8 = vpop.eup %2162 }
 0x161   :  { %557 = vrot.lane.b32.xlu1 %v2676_v13, %s2285_s21  ;;  %v423_v16 = vmul.f32 %v2159_v51, %v422_v54  ;;  %vm430_vm8 = vcmp.eq.f32.partialorder %v2625_v42, 0.0  ;;  %v391_v34 = vmul.f32 %v390_v58, %v2584_v9  ;;  %v431_v0 = vand.u32 2147483648, %v2625_v42 }
 0x162   :  { %v414_v5 = vmul.f32 %v2155_v15, %v413_v62  ;;  %v446_v6 = vmul.f32 %v2161_v48, %v2642_v32  ;;  %v437_v45 = vsub.f32 1.5, %v436_v61  ;;  %v455_v3 = vand.u32 2147483648, %v2642_v32 }
 0x163   :  { %v424_v20 = vmul.f32 0.5, %v423_v16  ;;  %v470_v2 = vmul.f32 %v2163_v8, %v2650_v41  ;;  %v2165_v12 = vpop.eup %2164  ;;  %v393_v54 = vsel %vm392_vm1, %v2584_v9, %v391_v34  ;;  %vm476_vm9 = vcmp.eq.f32.partialorder %v2650_v41, inf }
 0x164   :  { %v415_v28 = vmul.f32 %v414_v5, %v2597_v31  ;;  %v447_v26 = vmul.f32 %v2161_v48, %v446_v6  ;;  %v396_v15 = vsel %vm394_vm2, %v395_v44, %v393_v54  ;;  %v438_v58 = vmul.f32 %v2157_v56, %v437_v45 }
 0x165   :  { %v425_v62 = vsub.f32 1.5, %v424_v20  ;;  %vm452_vm10 = vcmp.eq.f32.partialorder %v2642_v32, inf  ;;  %v471_v61 = vmul.f32 %v2163_v8, %v470_v2  ;;  %vm478_vm11 = vcmp.eq.f32.partialorder %v2650_v41, 0.0 }
 0x166   :  { %v2167_v16 = vpop.eup %2166  ;;  %v500_v22 = vmul.f32 0.125, %v396_v15  ;;  %v417_v34 = vsel %vm416_vm3, %v2597_v31, %v415_v28  ;;  %v448_v5 = vmul.f32 0.5, %v447_v26  ;;  %vm454_vm12 = vcmp.eq.f32.partialorder %v2642_v32, 0.0 }
 0x167   :  { %v458_v6 = vmul.f32 %v2165_v12, %v2655_v57  ;;  %v420_v56 = vsel %vm418_vm4, %v419_v63, %v417_v34  ;;  %v439_v44 = vmul.f32 %v438_v58, %v2615_v33  ;;  %v426_v45 = vmul.f32 %v2159_v51, %v425_v62 }
 0x168   :  { %v472_v2 = vmul.f32 0.5, %v471_v61  ;;  %v2715_v20 = vsub.f32 1.0, %v500_v22  ;;  %v502_v54 = vmul.f32 0.125, %v420_v56  ;;  %v449_v15 = vsub.f32 1.5, %v448_v5 }
 0x169   :  { %v459_v9 = vmul.f32 %v2165_v12, %v458_v6  ;;  %v441_v26 = vsel %vm440_vm5, %v2615_v33, %v439_v44  ;;  %v427_v28 = vmul.f32 %v426_v45, %v2625_v42  ;;  %v482_v60 = vmul.f32 %v2167_v16, %v2671_v19 }
 0x16a   :  { %4314 = vst [vmem:[#allocation51_spill] sm:$0xff] %v2715_v20  ;;  %v473_v11 = vsub.f32 1.5, %v472_v2  ;;  %555 = vrot.lane.b32.xlu2 %v2715_v20, %s2285_s21  ;;  %v2724_v63 = vsub.f32 1.0, %v502_v54  ;;  %v444_v22 = vsel %vm442_vm6, %v443_v53, %v441_v26  ;;  %v450_v51 = vmul.f32 %v2161_v48, %v449_v15 }
 0x16b   :  { %v460_v58 = vmul.f32 0.5, %v459_v9  ;;  %v504_v62 = vmul.f32 0.125, %v444_v22  ;;  %v429_v61 = vsel %vm428_vm7, %v2625_v42, %v427_v28  ;;  %v483_v5 = vmul.f32 %v2167_v16, %v482_v60 }
 0x16c   :  { %4315 = vst [vmem:[#allocation52_spill] sm:$0xff] %v2724_v63  ;;  %v474_v34 = vmul.f32 %v2163_v8, %v473_v11  ;;  %559 = vrot.lane.b32.xlu0 %v2724_v63, %s2285_s21  ;;  %v432_v6 = vsel %vm430_vm8, %v431_v0, %v429_v61  ;;  %v451_v56 = vmul.f32 %v450_v51, %v2642_v32  ;;  %v479_v44 = vand.u32 2147483648, %v2650_v41 }
 0x16d   :  { %v461_v53 = vsub.f32 1.5, %v460_v58  ;;  %v2737_v48 = vsub.f32 1.0, %v504_v62  ;;  %v503_v9 = vmul.f32 0.125, %v432_v6  ;;  %v484_v2 = vmul.f32 0.5, %v483_v5 }
 0x16e   :  { %v475_v45 = vmul.f32 %v474_v34, %v2650_v41  ;;  %v453_v11 = vsel %vm452_vm10, %v2642_v32, %v451_v56  ;;  %vm464_vm13 = vcmp.eq.f32.partialorder %v2655_v57, inf  ;;  %v467_v0 = vand.u32 2147483648, %v2655_v57 }
 0x16f   :  { %4316 = vst [vmem:[#allocation53_spill] sm:$0xff] %v2737_v48  ;;  %v462_v60 = vmul.f32 %v2165_v12, %v461_v53  ;;  %563 = vrot.lane.b32.xlu1 %v2737_v48, %s2285_s21  ;;  %v2747_v8 = vsub.f32 1.0, %v503_v9  ;;  %v456_v54 = vsel %vm454_vm12, %v455_v3, %v453_v11  ;;  %v485_v26 = vsub.f32 1.5, %v484_v2 }
 0x170   :  { %v477_v15 = vsel %vm476_vm9, %v2650_v41, %v475_v45  ;;  %v505_v28 = vmul.f32 0.125, %v456_v54  ;;  %vm466_vm14 = vcmp.eq.f32.partialorder %v2655_v57, 0.0  ;;  %vm488_vm15 = vcmp.eq.f32.partialorder %v2671_v19, inf }
 0x171   :  { %4317 = vst [vmem:[#allocation54_spill] sm:$0xff] %v2747_v8  ;;  %v480_v12 = vsel %vm478_vm11, %v479_v44, %v477_v15  ;;  %v463_v22 = vmul.f32 %v462_v60, %v2655_v57  ;;  %v486_v58 = vmul.f32 %v2167_v16, %v485_v26  ;;  %v491_v16 = vand.u32 2147483648, %v2671_v19 }
 0x172   :  { %v507_v51 = vmul.f32 0.125, %v480_v12  ;;  %561 = vrot.lane.b32.xlu2 %v2747_v8, %s2285_s21  ;;  %v2760_v62 = vsub.f32 1.0, %v505_v28  ;;  %vm490_vm0 = vcmp.eq.f32.partialorder %v2671_v19, 0.0 }
 0x173   :  { %v465_v3 = vsel %vm464_vm13, %v2655_v57, %v463_v22  ;;  %v487_v5 = vmul.f32 %v486_v58, %v2671_v19 }
 0x174   :  { %4318 = vst [vmem:[#allocation55_spill] sm:$0xff] %v2760_v62  ;;  %v2763_v61 = vsub.f32 1.0, %v507_v51  ;;  %v468_v34 = vsel %vm466_vm14, %v467_v0, %v465_v3  ;;  %565 = vrot.lane.b32.xlu0 %v2760_v62, %s2285_s21 }
 0x175   :  { %v506_v6 = vmul.f32 0.125, %v468_v34  ;;  %v489_v56 = vsel %vm488_vm15, %v2671_v19, %v487_v5 }
 0x176   :  { %4319 = vst [vmem:[#allocation56_spill] sm:$0xff] %v2763_v61  ;;  %v492_v53 = vsel %vm490_vm0, %v491_v16, %v489_v56 }
 0x177   :  { %v2772_v44 = vsub.f32 1.0, %v506_v6  ;;  %569 = vrot.lane.b32.xlu1 %v2763_v61, %s2285_s21  ;;  %v508_v9 = vmul.f32 0.125, %v492_v53 }
 0x179   :  { %4320 = vst [vmem:[#allocation57_spill] sm:$0xff] %v2772_v44  ;;  %v2776_v45 = vsub.f32 1.0, %v508_v9 }
 0x17a   :  { %567 = vrot.lane.b32.xlu2 %v2772_v44, %s2285_s21 }
 0x17b   :  { %4321 = vst [vmem:[#allocation58_spill] sm:$0xff] %v2776_v45 }
 0x17c   :  { %571 = vrot.lane.b32.xlu0 %v2776_v45, %s2285_s21 }
 0x17f   :  { %703 = vrot.lane.b32.xlu1 %v2322_v10, %s2286_s22 }
 0x182   :  { %701 = vrot.lane.b32.xlu2 %v2315_v4, %s2286_s22 }
 0x184   :  { %705 = vrot.lane.b32.xlu0 %v2312_v1, %s2286_s22 }
 0x187   :  { %709 = vrot.lane.b32.xlu1 %v2329_v14, %s2286_s22 }
 0x18a   :  { %707 = vrot.lane.b32.xlu2 %v2318_v7, %s2286_s22 }
 0x18c   :  { %711 = vrot.lane.b32.xlu0 %v2353_v27, %s2286_s22 }
 0x18f   :  { %715 = vrot.lane.b32.xlu1 %v2341_v21, %s2286_s22 }
 0x192   :  { %713 = vrot.lane.b32.xlu2 %v2345_v23, %s2286_s22 }
 0x194   :  { %717 = vrot.lane.b32.xlu0 %v2356_v30, %s2286_s22 }
 0x197   :  { %721 = vrot.lane.b32.xlu1 %v2364_v35, %s2286_s22 }
 0x19a   :  { %719 = vrot.lane.b32.xlu2 %v2366_v37, %s2286_s22 }
 0x19c   :  { %723 = vrot.lane.b32.xlu0 %v2379_v43, %s2286_s22 }
 0x19f   :  { %727 = vrot.lane.b32.xlu1 %v2385_v47, %s2286_s22 }
 0x1a2   :  { %725 = vrot.lane.b32.xlu2 %v2387_v49, %s2286_s22  ;;  %v4182_v49 = vmov 0.0  }
 0x1a4   :  { %729 = vrot.lane.b32.xlu0 %v2400_v55, %s2286_s22 }
 0x1a7   :  { %765 = vrot.lane.b32.xlu1 %v2574_v25, %s2287_s23  ;;  %v544_v1 = vpop.permute.xlu2 %543 }
 0x1a8   :  { %v2897_v34 = vmax.f32 %v2569_v29, %v544_v1 }
 0x1aa   :  { %731 = vrot.lane.b32.xlu2 %v2406_v59, %s2286_s22  ;;  %vm638_vm4 = vcmp.ge.f32.partialorder %v2569_v29, %v2897_v34 }
 0x1ac   :  { %767 = vrot.lane.b32.xlu0 %v2569_v29, %s2287_s23 }
 0x1af   :  { %771 = vrot.lane.b32.xlu1 %v2610_v39, %s2287_s23 }
 0x1b2   :  { %769 = vrot.lane.b32.xlu2 %v2590_v18, %s2287_s23 }
 0x1b4   :  { %773 = vrot.lane.b32.xlu0 %v2646_v24, %s2287_s23  ;;  %v550_v4 = vpop.permute.xlu2 %549 }
 0x1b7   :  { %777 = vrot.lane.b32.xlu1 %v2662_v17, %s2287_s23 }
 0x1ba   :  { %775 = vrot.lane.b32.xlu2 %v2618_v46, %s2287_s23 }
 0x1bc   :  { %779 = vrot.lane.b32.xlu0 %v2715_v20, %s2287_s23 }
 0x1bf   :  { %783 = vrot.lane.b32.xlu1 %v2724_v63, %s2287_s23 }
 0x1c0   :  { %v542_v7 = vpop.permute.xlu0 %541 }
 0x1c1   :  { %v2853_v37 = vmax.f32 %v2574_v25, %v542_v7 }
 0x1c2   :  { %781 = vrot.lane.b32.xlu2 %v2676_v13, %s2287_s23 }
 0x1c3   :  { %v546_v10 = vpop.permute.xlu1 %545  ;;  %vm637_vm1 = vcmp.ge.f32.partialorder %v2574_v25, %v2853_v37 }
 0x1c4   :  { %v2834_v14 = vpop.permute.xlu2 %555  ;;  %785 = vrot.lane.b32.xlu0 %v2747_v8, %s2287_s23  ;;  %v2862_v55 = vsel %vm637_vm1, 1.0, %v4182_v49  ;;  %v2915_v9 = vmax.f32 %v2590_v18, %v546_v10 }
 0x1c5   :  { %4323 = vst [vmem:[#allocation60_spill] sm:$0xff] %v2862_v55 }
 0x1c6   :  { %vm639_vm6 = vcmp.ge.f32.partialorder %v2590_v18, %v2915_v9 }
 0x1c7   :  { %789 = vrot.lane.b32.xlu1 %v2760_v62, %s2287_s23 }
 0x1c8   :  { %v548_v21 = vpop.permute.xlu0 %547 }
 0x1c9   :  { %v2865_v59 = vmax.f32 %v2610_v39, %v548_v21  ;;  %v2922_v21 = vsel %vm638_vm4, 1.0, %v4182_v49 }
 0x1ca   :  { %787 = vrot.lane.b32.xlu2 %v2737_v48, %s2287_s23 }
 0x1cb   :  { %v552_v27 = vpop.permute.xlu1 %551  ;;  %vm640_vm2 = vcmp.ge.f32.partialorder %v2610_v39, %v2865_v59 }
 0x1cc   :  { %v2842_v23 = vpop.permute.xlu2 %561  ;;  %791 = vrot.lane.b32.xlu0 %v2772_v44, %s2287_s23  ;;  %v2881_v26 = vsel %vm640_vm2, 1.0, %v4182_v49 }
 0x1cd   :  { %4325 = vst [vmem:[#allocation62_spill] sm:$0xff] %v2881_v26 }
 0x1cf   :  { %795 = vrot.lane.b32.xlu1 %v2776_v45, %s2287_s23 }
 0x1d0   :  { %v554_v35 = vpop.permute.xlu0 %553 }
 0x1d1   :  { %v2884_v28 = vmax.f32 %v2662_v17, %v554_v35 }
 0x1d2   :  { %793 = vrot.lane.b32.xlu2 %v2763_v61, %s2287_s23 }
 0x1d3   :  { %v2855_v43 = vpop.permute.xlu1 %557  ;;  %vm643_vm3 = vcmp.ge.f32.partialorder %v2662_v17, %v2884_v28 }
 0x1d4   :  { %v2850_v30 = vpop.permute.xlu2 %567  ;;  %v2903_v6 = vsel %vm643_vm3, 1.0, %v4182_v49 }
 0x1d5   :  { %4327 = vst [vmem:[#allocation64_spill] sm:$0xff] %v2903_v6 }
 0x1dc   :  { %v2859_v47 = vpop.permute.xlu2 %701 }
 0x1dd   :  { %4322 = vst [vmem:[#allocation59_spill] sm:$0xff] %v2859_v47  ;;  %v2869_v2 = vmul.f32 %v2859_v47, %v2862_v55 }
 0x1de   :  { %v560_v11 = vpop.permute.xlu0 %559 }
 0x1df   :  { %v829_v60 = vmul.f32 5.0, %v2869_v2  ;;  %v2906_v16 = vmax.f32 %v2724_v63, %v560_v11  ;;  %v2927_v11 = vmax.f32 %v2646_v24, %v550_v4 }
 0x1e1   :  { %v845_v0 = vmul.f32 %v829_v60, %v2505_v36  ;;  %v2875_v54 = vpop.permute.xlu1 %563  ;;  %vm646_vm5 = vcmp.ge.f32.partialorder %v2724_v63, %v2906_v16  ;;  %vm641_vm7 = vcmp.ge.f32.partialorder %v2646_v24, %v2927_v11 }
 0x1e3   :  { %877 = vrot.lane.b32.xlu0 %v845_v0, %s2287_s23  ;;  %v2939_v0 = vsel %vm646_vm5, 1.0, %v4182_v49 }
 0x1e4   :  { %v2878_v15 = vpop.permute.xlu2 %707  ;;  %4330 = vst [vmem:[#allocation67_spill] sm:$0xff] %v2939_v0 }
 0x1e5   :  { %4324 = vst [vmem:[#allocation61_spill] sm:$0xff] %v2878_v15  ;;  %v2888_v12 = vmul.f32 %v2878_v15, %v2881_v26 }
 0x1e6   :  { %v566_v22 = vpop.permute.xlu0 %565 }
 0x1e7   :  { %v832_v51 = vmul.f32 5.0, %v2888_v12 }
 0x1e9   :  { %v848_v58 = vmul.f32 %v832_v51, %v2517_v50  ;;  %v2894_v3 = vpop.permute.xlu1 %569 }
 0x1eb   :  { %883 = vrot.lane.b32.xlu0 %v848_v58, %s2287_s23  ;;  %v2943_v58 = vmax.f32 %v2760_v62, %v566_v22 }
 0x1ec   :  { %v2900_v5 = vpop.permute.xlu2 %713 }
 0x1ed   :  { %4326 = vst [vmem:[#allocation63_spill] sm:$0xff] %v2900_v5  ;;  %v2910_v56 = vmul.f32 %v2900_v5, %v2903_v6  ;;  %vm649_vm8 = vcmp.ge.f32.partialorder %v2760_v62, %v2943_v58  ;;  %v4333_v5 = vmov 0.0   ;;  %v3175_v6 = vld [vmem:[#allocation2 + $0x38] sm:$0xff] }
 0x1ee   :  { %v572_v53 = vpop.permute.xlu0 %571 }
 0x1ef   :  { %v835_v1 = vmul.f32 5.0, %v2910_v56 }
 0x1f1   :  { %v851_v7 = vmul.f32 %v835_v1, %v2537_v52  ;;  %v2924_v35 = vpop.permute.xlu1 %703  ;;  %v2952_v1 = vsel %vm639_vm6, 1.0, %v4182_v49  ;;  %v2958_v52 = vmax.f32 %v2618_v46, %v552_v27 }
 0x1f2   :  { %4328 = vst [vmem:[#allocation65_spill] sm:$0xff] %v2924_v35  ;;  %v2931_v60 = vmul.f32 %v2924_v35, %v2922_v21  ;;  %v3151_v35 = vld [vmem:[#allocation2 + $0x8] sm:$0xff] }
 0x1f3   :  { %889 = vrot.lane.b32.xlu0 %v851_v7, %s2287_s23  ;;  %vm642_vm9 = vcmp.ge.f32.partialorder %v2618_v46, %v2958_v52  ;;  %v3061_v46 = vmax.f32 %v2737_v48, %v2875_v54  ;;  %v3078_v54 = vmax.f32 %v2772_v44, %v2850_v30 }
 0x1f4   :  { %v2936_v10 = vpop.permute.xlu2 %719  ;;  %v830_v51 = vmul.f32 5.0, %v2931_v60 }
 0x1f5   :  { %4329 = vst [vmem:[#allocation66_spill] sm:$0xff] %v2936_v10  ;;  %v2947_v4 = vmul.f32 %v2936_v10, %v2939_v0  ;;  %vm648_vm14 = vcmp.ge.f32.partialorder %v2737_v48, %v3061_v46  ;;  %vm650_vm15 = vcmp.ge.f32.partialorder %v2772_v44, %v3078_v54 }
 0x1f6   :  { %v2954_v7 = vpop.permute.xlu0 %705  ;;  %v846_v50 = vmul.f32 %v830_v51, %v2508_v38  ;;  %v2972_v51 = vsel %vm641_vm7, 1.0, %v4333_v5  ;;  %v2977_v38 = vmax.f32 %v2715_v20, %v2834_v14  ;;  %v2994_v14 = vmax.f32 %v2776_v45, %v572_v53  ;;  %4348 = vst [vmem:[#allocation81_spill] sm:$0xff] %v3078_v54 }
 0x1f7   :  { %4331 = vst [vmem:[#allocation68_spill] sm:$0xff] %v2954_v7  ;;  %v2962_v22 = vmul.f32 %v2954_v7, %v2952_v1  ;;  %v838_v10 = vmul.f32 5.0, %v2947_v4  ;;  %v3011_v53 = vmax.f32 %v2676_v13, %v2855_v43  ;;  %v3093_v30 = vsel %vm648_vm14, 1.0, %v4333_v5 }
 0x1f8   :  { %879 = vrot.lane.b32.xlu2 %v846_v50, %s2287_s23  ;;  %vm644_vm10 = vcmp.ge.f32.partialorder %v2715_v20, %v2977_v38  ;;  %vm652_vm11 = vcmp.ge.f32.partialorder %v2776_v45, %v2994_v14  ;;  %4350 = vst [vmem:[#allocation82_spill] sm:$0xff] %v3093_v30  ;;  %v3113_v44 = vsel %vm650_vm15, 1.0, %v4333_v5 }
 0x1f9   :  { %v854_v49 = vmul.f32 %v838_v10, %v2597_v31  ;;  %v2969_v63 = vpop.permute.xlu1 %709  ;;  %v831_v27 = vmul.f32 5.0, %v2962_v22  ;;  %v2990_v31 = vsel %vm649_vm8, 1.0, %v4333_v5  ;;  %vm645_vm12 = vcmp.ge.f32.partialorder %v2676_v13, %v3011_v53  ;;  %4353 = vst [vmem:[#allocation85_spill] sm:$0xff] %v3113_v44 }
 0x1fa   :  { %4332 = vst [vmem:[#allocation69_spill] sm:$0xff] %v2969_v63  ;;  %v2981_v17 = vmul.f32 %v2969_v63, %v2972_v51  ;;  %v3043_v45 = vsel %vm652_vm11, 1.0, %v4333_v5 }
 0x1fb   :  { %895 = vrot.lane.b32.xlu0 %v854_v49, %s2287_s23  ;;  %v847_v50 = vmul.f32 %v831_v27, %v2513_v40  ;;  %4335 = vst [vmem:[#allocation71_spill] sm:$0xff] %v2990_v31  ;;  %v3004_v49 = vsel %vm642_vm9, 1.0, %v4333_v5  ;;  %v4337_v40 = vld [vmem:[#allocation32_spill] sm:$0xff] }
 0x1fc   :  { %v2987_v10 = vpop.permute.xlu2 %725  ;;  %v833_v62 = vmul.f32 5.0, %v2981_v17  ;;  %4342 = vst [vmem:[#allocation76_spill] sm:$0xff] %v3043_v45 }
 0x1fd   :  { %4334 = vst [vmem:[#allocation70_spill] sm:$0xff] %v2987_v10  ;;  %v2998_v15 = vmul.f32 %v2987_v10, %v2990_v31  ;;  %881 = vrot.lane.b32.xlu1 %v847_v50, %s2287_s23 }
 0x1fe   :  { %v3006_v27 = vpop.permute.xlu0 %711  ;;  %v849_v39 = vmul.f32 %v833_v62, %v4337_v40  ;;  %v3025_v62 = vsel %vm644_vm10, 1.0, %v4333_v5  ;;  %v3030_v40 = vmax.f32 %v2747_v8, %v2842_v23 }
 0x1ff   :  { %4336 = vst [vmem:[#allocation72_spill] sm:$0xff] %v3006_v27  ;;  %v3015_v10 = vmul.f32 %v3006_v27, %v3004_v49  ;;  %v841_v50 = vmul.f32 5.0, %v2998_v15 }
 0x200   :  { %885 = vrot.lane.b32.xlu2 %v849_v39, %s2287_s23  ;;  %4339 = vst [vmem:[#allocation74_spill] sm:$0xff] %v3025_v62  ;;  %v4340_v39 = vld [vmem:[#allocation31_spill] sm:$0xff]  ;;  %vm647_vm13 = vcmp.ge.f32.partialorder %v2747_v8, %v3030_v40 }
 0x201   :  { %v857_v36 = vmul.f32 %v841_v50, %v2642_v32  ;;  %v3022_v47 = vpop.permute.xlu1 %715  ;;  %v834_v43 = vmul.f32 5.0, %v3015_v10 }
 0x202   :  { %4338 = vst [vmem:[#allocation73_spill] sm:$0xff] %v3022_v47  ;;  %v3034_v25 = vmul.f32 %v3022_v47, %v3025_v62  ;;  %v3073_v47 = vsel %vm647_vm13, 1.0, %v4333_v5 }
 0x203   :  { %901 = vrot.lane.b32.xlu0 %v857_v36, %s2287_s23  ;;  %v850_v50 = vmul.f32 %v834_v43, %v4340_v39  ;;  %v3054_v36 = vsel %vm645_vm12, 1.0, %v4333_v5  ;;  %v4345_v39 = vld [vmem:[#allocation37_spill] sm:$0xff]  ;;  %4347 = vst [vmem:[#allocation80_spill] sm:$0xff] %v3073_v47 }
 0x204   :  { %v3040_v32 = vpop.permute.xlu2 %731  ;;  %v836_v27 = vmul.f32 5.0, %v3034_v25  ;;  %4343 = vst [vmem:[#allocation77_spill] sm:$0xff] %v3054_v36 }
 0x205   :  { %4341 = vst [vmem:[#allocation75_spill] sm:$0xff] %v3040_v32  ;;  %v3048_v23 = vmul.f32 %v3040_v32, %v3043_v45  ;;  %887 = vrot.lane.b32.xlu1 %v850_v50, %s2287_s23  ;;  %v3163_v45 = vld [vmem:[#allocation2 + $0x20] sm:$0xff] }
 0x206   :  { %v3056_v43 = vpop.permute.xlu0 %717  ;;  %v852_v13 = vmul.f32 %v836_v27, %v4345_v39 }
 0x207   :  { %4344 = vst [vmem:[#allocation78_spill] sm:$0xff] %v3056_v43  ;;  %v3065_v32 = vmul.f32 %v3056_v43, %v3054_v36  ;;  %v844_v50 = vmul.f32 5.0, %v3048_v23 }
 0x208   :  { %891 = vrot.lane.b32.xlu2 %v852_v13, %s2287_s23  ;;  %v4349_v13 = vld [vmem:[#allocation34_spill] sm:$0xff] }
 0x209   :  { %v860_v8 = vmul.f32 %v844_v50, %v2671_v19  ;;  %v3070_v7 = vpop.permute.xlu1 %721  ;;  %v837_v27 = vmul.f32 5.0, %v3065_v32 }
 0x20a   :  { %4346 = vst [vmem:[#allocation79_spill] sm:$0xff] %v3070_v7  ;;  %v3082_v39 = vmul.f32 %v3070_v7, %v3073_v47 }
 0x20b   :  { %907 = vrot.lane.b32.xlu0 %v860_v8, %s2287_s23  ;;  %v853_v50 = vmul.f32 %v837_v27, %v4349_v13  ;;  %v3100_v8 = vmax.f32 %v2763_v61, %v2894_v3 }
 0x20c   :  { %v770_v19 = vpop.permute.xlu2 %769  ;;  %v839_v43 = vmul.f32 5.0, %v3082_v39 }
 0x20d   :  { %893 = vrot.lane.b32.xlu1 %v853_v50, %s2287_s23  ;;  %v3107_v50 = vld [vmem:[#allocation2 + $0x10] sm:$0xff]  ;;  %vm651_vm0 = vcmp.ge.f32.partialorder %v2763_v61, %v3100_v8 }
 0x20e   :  { %v3095_v7 = vpop.permute.xlu0 %723  ;;  %v855_v18 = vmul.f32 %v839_v43, %v2625_v42  ;;  %v815_v13 = vsub.f32 %v3107_v50, %v770_v19 }
 0x20f   :  { %4351 = vst [vmem:[#allocation83_spill] sm:$0xff] %v3095_v7  ;;  %v3104_v27 = vmul.f32 %v3095_v7, %v3093_v30  ;;  %v3127_v7 = vsel %vm651_vm0, 1.0, %v4333_v5 }
 0x210   :  { %897 = vrot.lane.b32.xlu2 %v855_v18, %s2287_s23  ;;  %4354 = vst [vmem:[#allocation86_spill] sm:$0xff] %v3127_v7 }
 0x211   :  { %v3110_v48 = vpop.permute.xlu1 %727  ;;  %v840_v43 = vmul.f32 5.0, %v3104_v27 }
 0x212   :  { %4352 = vst [vmem:[#allocation84_spill] sm:$0xff] %v3110_v48  ;;  %v3118_v3 = vmul.f32 %v3110_v48, %v3113_v44  ;;  %v3184_v44 = vld [vmem:[#allocation2 + $0x50] sm:$0xff] }
 0x213   :  { %977 = vrot.lane.b32.xlu0 %v815_v13, %s2286_s22  ;;  %v856_v18 = vmul.f32 %v840_v43, %v2615_v33  ;;  %v3137_v13 = vld [vmem:[#allocation2 + $0x28] sm:$0xff] }
 0x214   :  { %v776_v42 = vpop.permute.xlu2 %775  ;;  %v842_v19 = vmul.f32 5.0, %v3118_v3 }
 0x215   :  { %899 = vrot.lane.b32.xlu1 %v856_v18, %s2287_s23  ;;  %v818_v43 = vsub.f32 %v3137_v13, %v776_v42 }
 0x216   :  { %v3129_v20 = vpop.permute.xlu0 %729  ;;  %v858_v48 = vmul.f32 %v842_v19, %v2655_v57  ;;  %v3144_v19 = vld [vmem:[#allocation2] sm:$0xff] }
 0x217   :  { %4355 = vst [vmem:[#allocation87_spill] sm:$0xff] %v3129_v20  ;;  %v3134_v63 = vmul.f32 %v3129_v20, %v3127_v7  ;;  %v3188_v7 = vld [vmem:[#allocation2 + $0x60] sm:$0xff] }
 0x218   :  { %903 = vrot.lane.b32.xlu2 %v858_v48, %s2287_s23  ;;  %v3148_v48 = vld [vmem:[#allocation2 + $0x40] sm:$0xff] }
 0x219   :  { %v766_v33 = vpop.permute.xlu1 %765  ;;  %v843_v18 = vmul.f32 5.0, %v3134_v63 }
 0x21a   :  { %v813_v57 = vsub.f32 %v3144_v19, %v766_v33 }
 0x21b   :  { %983 = vrot.lane.b32.xlu0 %v818_v43, %s2286_s22  ;;  %v859_v5 = vmul.f32 %v843_v18, %v2650_v41 }
 0x21c   :  { %v782_v61 = vpop.permute.xlu2 %781 }
 0x21d   :  { %905 = vrot.lane.b32.xlu1 %v859_v5, %s2287_s23  ;;  %v821_v42 = vsub.f32 %v3148_v48, %v782_v61  ;;  %v3156_v5 = vld [vmem:[#allocation2 + $0x18] sm:$0xff] }
 0x21e   :  { %v768_v20 = vpop.permute.xlu0 %767 }
 0x21f   :  { %v814_v43 = vsub.f32 %v3151_v35, %v768_v20 }
 0x220   :  { %973 = vrot.lane.b32.xlu2 %v813_v57, %s2286_s22  ;;  %v3160_v57 = vld [vmem:[#allocation2 + $0x58] sm:$0xff] }
 0x221   :  { %v772_v24 = vpop.permute.xlu1 %771 }
 0x222   :  { %v816_v33 = vsub.f32 %v3156_v5, %v772_v24 }
 0x223   :  { %989 = vrot.lane.b32.xlu0 %v821_v42, %s2286_s22  ;;  %v3168_v42 = vld [vmem:[#allocation2 + $0x30] sm:$0xff] }
 0x224   :  { %v788_v18 = vpop.permute.xlu2 %787 }
 0x225   :  { %975 = vrot.lane.b32.xlu1 %v814_v43, %s2286_s22  ;;  %v824_v61 = vsub.f32 %v3160_v57, %v788_v18 }
 0x226   :  { %v774_v41 = vpop.permute.xlu0 %773 }
 0x227   :  { %v817_v20 = vsub.f32 %v3163_v45, %v774_v41 }
 0x228   :  { %979 = vrot.lane.b32.xlu2 %v816_v33, %s2286_s22  ;;  %v3172_v33 = vld [vmem:[#allocation2 + $0x70] sm:$0xff] }
 0x229   :  { %v778_v29 = vpop.permute.xlu1 %777 }
 0x22a   :  { %v819_v24 = vsub.f32 %v3168_v42, %v778_v29 }
 0x22b   :  { %995 = vrot.lane.b32.xlu0 %v824_v61, %s2286_s22  ;;  %v3180_v61 = vld [vmem:[#allocation2 + $0x48] sm:$0xff] }
 0x22c   :  { %v794_v43 = vpop.permute.xlu2 %793 }
 0x22d   :  { %981 = vrot.lane.b32.xlu1 %v817_v20, %s2286_s22  ;;  %v827_v18 = vsub.f32 %v3172_v33, %v794_v43 }
 0x22e   :  { %v780_v31 = vpop.permute.xlu0 %779 }
 0x22f   :  { %v820_v41 = vsub.f32 %v3175_v6, %v780_v31 }
 0x230   :  { %985 = vrot.lane.b32.xlu2 %v819_v24, %s2286_s22 }
 0x231   :  { %v784_v0 = vpop.permute.xlu1 %783 }
 0x232   :  { %v822_v29 = vsub.f32 %v3180_v61, %v784_v0 }
 0x233   :  { %1001 = vrot.lane.b32.xlu0 %v827_v18, %s2286_s22 }
 0x235   :  { %987 = vrot.lane.b32.xlu1 %v820_v41, %s2286_s22  ;;  %v3192_v41 = vld [vmem:[#allocation2 + $0x68] sm:$0xff] }
 0x236   :  { %v786_v20 = vpop.permute.xlu0 %785 }
 0x237   :  { %v823_v43 = vsub.f32 %v3184_v44, %v786_v20 }
 0x238   :  { %991 = vrot.lane.b32.xlu2 %v822_v29, %s2286_s22  ;;  %v3196_v29 = vld [vmem:[#allocation2 + $0x78] sm:$0xff] }
 0x239   :  { %v790_v24 = vpop.permute.xlu1 %789 }
 0x23a   :  { %v825_v31 = vsub.f32 %v3188_v7, %v790_v24 }
 0x23d   :  { %993 = vrot.lane.b32.xlu1 %v823_v43, %s2286_s22 }
 0x23e   :  { %v792_v18 = vpop.permute.xlu0 %791 }
 0x23f   :  { %v826_v0 = vsub.f32 %v3192_v41, %v792_v18 }
 0x240   :  { %997 = vrot.lane.b32.xlu2 %v825_v31, %s2286_s22 }
 0x241   :  { %v796_v26 = vpop.permute.xlu1 %795 }
 0x242   :  { %v828_v20 = vsub.f32 %v3196_v29, %v796_v26 }
 0x245   :  { %999 = vrot.lane.b32.xlu1 %v826_v0, %s2286_s22 }
 0x248   :  { %1003 = vrot.lane.b32.xlu2 %v828_v20, %s2286_s22 }
 0x252   :  { %v3200_v43 = vpop.permute.xlu2 %879 }
 0x253   :  { %4356 = vst [vmem:[#allocation88_spill] sm:$0xff] %v3200_v43 }
 0x255   :  { %v3202_v47 = vpop.permute.xlu0 %877 }
 0x256   :  { %4357 = vst [vmem:[#allocation89_spill] sm:$0xff] %v3202_v47 }
 0x25a   :  { %v3204_v24 = vpop.permute.xlu2 %885 }
 0x25b   :  { %4358 = vst [vmem:[#allocation90_spill] sm:$0xff] %v3204_v24  ;;  %v941_v24 = vmul.f32 2.0, %v2869_v2 }
 0x25d   :  { %v3206_v31 = vpop.permute.xlu0 %883 }
 0x25e   :  { %4359 = vst [vmem:[#allocation91_spill] sm:$0xff] %v3206_v31 }
 0x262   :  { %v3208_v30 = vpop.permute.xlu2 %891 }
 0x263   :  { %4360 = vst [vmem:[#allocation92_spill] sm:$0xff] %v3208_v30 }
 0x265   :  { %v3210_v18 = vpop.permute.xlu0 %889 }
 0x266   :  { %4361 = vst [vmem:[#allocation93_spill] sm:$0xff] %v3210_v18 }
 0x26a   :  { %v3212_v55 = vpop.permute.xlu2 %897 }
 0x26b   :  { %4362 = vst [vmem:[#allocation94_spill] sm:$0xff] %v3212_v55 }
 0x26d   :  { %v3214_v0 = vpop.permute.xlu0 %895 }
 0x26e   :  { %4363 = vst [vmem:[#allocation95_spill] sm:$0xff] %v3214_v0 }
 0x26f   :  { %v3216_v62 = vpop.permute.xlu1 %881 }
 0x270   :  { %4364 = vst [vmem:[#allocation96_spill] sm:$0xff] %v3216_v62 }
 0x272   :  { %v3218_v26 = vpop.permute.xlu2 %903 }
 0x273   :  { %4365 = vst [vmem:[#allocation97_spill] sm:$0xff] %v3218_v26  ;;  %v944_v26 = vmul.f32 2.0, %v2888_v12 }
 0x275   :  { %v3220_v20 = vpop.permute.xlu0 %901 }
 0x276   :  { %4366 = vst [vmem:[#allocation98_spill] sm:$0xff] %v3220_v20 }
 0x277   :  { %v3222_v43 = vpop.permute.xlu1 %887 }
 0x278   :  { %4367 = vst [vmem:[#allocation99_spill] sm:$0xff] %v3222_v43  ;;  %v943_v43 = vmul.f32 2.0, %v2962_v22 }
 0x27a   :  { %v3225_v47 = vpop.permute.xlu2 %973 }
 0x27b   :  { %4368 = vst [vmem:[#allocation100_spill] sm:$0xff] %v3225_v47  ;;  %v1021_v30 = vmul.f32 %v3225_v47, %v941_v24 }
 0x27d   :  { %v3228_v31 = vpop.permute.xlu0 %907  ;;  %v1037_v55 = vmul.f32 %v1021_v30, %v3225_v47  ;;  %v947_v30 = vmul.f32 2.0, %v2910_v56  ;;  %v946_v47 = vmul.f32 2.0, %v3015_v10 }
 0x27e   :  { %4369 = vst [vmem:[#allocation101_spill] sm:$0xff] %v3228_v31 }
 0x27f   :  { %v3231_v18 = vpop.permute.xlu1 %893  ;;  %1069 = vrot.lane.b32.xlu1 %v1037_v55, %s2287_s23 }
 0x280   :  { %4370 = vst [vmem:[#allocation102_spill] sm:$0xff] %v3231_v18 }
 0x282   :  { %v3235_v0 = vpop.permute.xlu2 %979 }
 0x283   :  { %4371 = vst [vmem:[#allocation103_spill] sm:$0xff] %v3235_v0  ;;  %v1024_v20 = vmul.f32 %v3235_v0, %v944_v26 }
 0x285   :  { %v3239_v62 = vpop.permute.xlu0 %977  ;;  %v1040_v24 = vmul.f32 %v1024_v20, %v3235_v0  ;;  %v949_v0 = vmul.f32 2.0, %v3065_v32 }
 0x286   :  { %4372 = vst [vmem:[#allocation104_spill] sm:$0xff] %v3239_v62  ;;  %v1023_v31 = vmul.f32 %v3239_v62, %v943_v43 }
 0x287   :  { %v3243_v36 = vpop.permute.xlu1 %899  ;;  %1075 = vrot.lane.b32.xlu1 %v1040_v24, %s2287_s23  ;;  %v950_v24 = vmul.f32 2.0, %v2947_v4 }
 0x288   :  { %4373 = vst [vmem:[#allocation105_spill] sm:$0xff] %v3243_v36  ;;  %v1039_v55 = vmul.f32 %v1023_v31, %v3239_v62 }
 0x28a   :  { %1073 = vrot.lane.b32.xlu2 %v1039_v55, %s2287_s23  ;;  %v3249_v18 = vpop.permute.xlu2 %985 }
 0x28b   :  { %4374 = vst [vmem:[#allocation106_spill] sm:$0xff] %v3249_v18  ;;  %v1027_v26 = vmul.f32 %v3249_v18, %v947_v30 }
 0x28d   :  { %v3253_v54 = vpop.permute.xlu0 %983  ;;  %v1043_v43 = vmul.f32 %v1027_v26, %v3249_v18 }
 0x28e   :  { %4375 = vst [vmem:[#allocation107_spill] sm:$0xff] %v3253_v54  ;;  %v1026_v20 = vmul.f32 %v3253_v54, %v946_v47 }
 0x28f   :  { %v3257_v36 = vpop.permute.xlu1 %905  ;;  %1081 = vrot.lane.b32.xlu1 %v1043_v43, %s2287_s23  ;;  %v942_v43 = vmul.f32 2.0, %v2931_v60 }
 0x290   :  { %4376 = vst [vmem:[#allocation108_spill] sm:$0xff] %v3257_v36  ;;  %v1042_v31 = vmul.f32 %v1026_v20, %v3253_v54 }
 0x292   :  { %1079 = vrot.lane.b32.xlu2 %v1042_v31, %s2287_s23  ;;  %v3263_v55 = vpop.permute.xlu2 %991 }
 0x293   :  { %4377 = vst [vmem:[#allocation109_spill] sm:$0xff] %v3263_v55  ;;  %v1030_v30 = vmul.f32 %v3263_v55, %v950_v24  ;;  %v953_v24 = vmul.f32 2.0, %v2998_v15 }
 0x295   :  { %v3267_v62 = vpop.permute.xlu0 %989  ;;  %v1046_v47 = vmul.f32 %v1030_v30, %v3263_v55  ;;  %v952_v55 = vmul.f32 2.0, %v3104_v27 }
 0x296   :  { %4378 = vst [vmem:[#allocation110_spill] sm:$0xff] %v3267_v62  ;;  %v1029_v26 = vmul.f32 %v3267_v62, %v949_v0 }
 0x297   :  { %v3272_v18 = vpop.permute.xlu1 %975  ;;  %1087 = vrot.lane.b32.xlu1 %v1046_v47, %s2287_s23 }
 0x298   :  { %4379 = vst [vmem:[#allocation111_spill] sm:$0xff] %v3272_v18  ;;  %v1045_v20 = vmul.f32 %v1029_v26, %v3267_v62  ;;  %v1022_v31 = vmul.f32 %v3272_v18, %v942_v43  ;;  %v945_v43 = vmul.f32 2.0, %v2981_v17 }
 0x29a   :  { %1085 = vrot.lane.b32.xlu2 %v1045_v20, %s2287_s23  ;;  %v3279_v54 = vpop.permute.xlu2 %997  ;;  %v1038_v30 = vmul.f32 %v1022_v31, %v3272_v18 }
 0x29b   :  { %4380 = vst [vmem:[#allocation112_spill] sm:$0xff] %v3279_v54  ;;  %v1033_v0 = vmul.f32 %v3279_v54, %v953_v24  ;;  %v956_v24 = vmul.f32 2.0, %v3048_v23 }
 0x29c   :  { %1071 = vrot.lane.b32.xlu0 %v1038_v30, %s2287_s23 }
 0x29d   :  { %v3285_v36 = vpop.permute.xlu0 %995  ;;  %v1049_v47 = vmul.f32 %v1033_v0, %v3279_v54  ;;  %v955_v54 = vmul.f32 2.0, %v3134_v63 }
 0x29e   :  { %4381 = vst [vmem:[#allocation113_spill] sm:$0xff] %v3285_v36  ;;  %v1032_v26 = vmul.f32 %v3285_v36, %v952_v55 }
 0x29f   :  { %v3290_v62 = vpop.permute.xlu1 %981  ;;  %1093 = vrot.lane.b32.xlu1 %v1049_v47, %s2287_s23 }
 0x2a0   :  { %v1048_v20 = vmul.f32 %v1032_v26, %v3285_v36  ;;  %v1025_v31 = vmul.f32 %v3290_v62, %v945_v43  ;;  %v948_v43 = vmul.f32 2.0, %v3034_v25 }
 0x2a2   :  { %1091 = vrot.lane.b32.xlu2 %v1048_v20, %s2287_s23  ;;  %v3297_v30 = vpop.permute.xlu2 %1003  ;;  %v1041_v0 = vmul.f32 %v1025_v31, %v3290_v62 }
 0x2a3   :  { %v1036_v55 = vmul.f32 %v3297_v30, %v956_v24 }
 0x2a4   :  { %1077 = vrot.lane.b32.xlu0 %v1041_v0, %s2287_s23  ;;  %v951_v0 = vmul.f32 2.0, %v3082_v39 }
 0x2a5   :  { %v3303_v18 = vpop.permute.xlu0 %1001  ;;  %v1052_v47 = vmul.f32 %v1036_v55, %v3297_v30 }
 0x2a6   :  { %v1035_v26 = vmul.f32 %v3303_v18, %v955_v54 }
 0x2a7   :  { %v3308_v36 = vpop.permute.xlu1 %987  ;;  %1099 = vrot.lane.b32.xlu1 %v1052_v47, %s2287_s23 }
 0x2a8   :  { %v1051_v20 = vmul.f32 %v1035_v26, %v3303_v18  ;;  %v1028_v31 = vmul.f32 %v3308_v36, %v948_v43  ;;  %v954_v26 = vmul.f32 2.0, %v3118_v3 }
 0x2aa   :  { %1097 = vrot.lane.b32.xlu2 %v1051_v20, %s2287_s23  ;;  %v1044_v24 = vmul.f32 %v1028_v31, %v3308_v36 }
 0x2ac   :  { %1083 = vrot.lane.b32.xlu0 %v1044_v24, %s2287_s23  ;;  %v4405_v24 = vld [vmem:[#allocation81_spill] sm:$0xff] }
 0x2af   :  { %v3317_v55 = vpop.permute.xlu1 %993  ;;  %1153 = vrot.lane.b32.xlu1 %v2962_v22, %s2287_s23 }
 0x2b0   :  { %v1031_v54 = vmul.f32 %v3317_v55, %v951_v0  ;;  %v4406_v0 = vld [vmem:[#allocation77_spill] sm:$0xff] }
 0x2b2   :  { %1151 = vrot.lane.b32.xlu2 %v2931_v60, %s2287_s23  ;;  %v1047_v47 = vmul.f32 %v1031_v54, %v3317_v55  ;;  %v1413_v54 = vsub.f32 1.0, %v4406_v0 }
 0x2b4   :  { %1089 = vrot.lane.b32.xlu0 %v1047_v47, %s2287_s23  ;;  %v4407_v47 = vld [vmem:[#allocation25_spill] sm:$0xff] }
 0x2b7   :  { %1159 = vrot.lane.b32.xlu1 %v3015_v10, %s2287_s23  ;;  %v3329_v43 = vpop.permute.xlu1 %999  ;;  %v3428_v10 = vmul.f32 %v3188_v7, %v3188_v7  ;;  %v3446_v7 = vmul.f32 %v3196_v29, %v3196_v29 }
 0x2b8   :  { %v1034_v20 = vmul.f32 %v3329_v43, %v954_v26  ;;  %v4408_v26 = vld [vmem:[#allocation74_spill] sm:$0xff] }
 0x2ba   :  { %1157 = vrot.lane.b32.xlu2 %v2981_v17, %s2287_s23  ;;  %v1050_v22 = vmul.f32 %v1034_v20, %v3329_v43  ;;  %v3368_v17 = vmul.f32 %v3163_v45, %v3163_v45  ;;  %v3390_v45 = vmul.f32 %v3168_v42, %v3168_v42  ;;  %v1412_v20 = vsub.f32 1.0, %v4408_v26 }
 0x2bc   :  { %1095 = vrot.lane.b32.xlu0 %v1050_v22, %s2287_s23  ;;  %4382 = vst [vmem:[#allocation114_spill] sm:$0xff] %v3368_v17 }
 0x2bf   :  { %1165 = vrot.lane.b32.xlu1 %v3065_v32, %s2287_s23  ;;  %v3360_v32 = vmul.f32 %v3144_v19, %v3144_v19  ;;  %v3464_v19 = vmul.f32 %v3160_v57, %v3160_v57 }
 0x2c2   :  { %1163 = vrot.lane.b32.xlu2 %v3034_v25, %s2287_s23  ;;  %v3354_v25 = vmul.f32 %v3151_v35, %v3151_v35  ;;  %v3412_v35 = vmul.f32 %v3107_v50, %v3107_v50  ;;  %v3452_v50 = vmul.f32 %v3148_v48, %v3148_v48 }
 0x2c4   :  { %1149 = vrot.lane.b32.xlu0 %v2869_v2, %s2287_s23  ;;  %v3382_v2 = vmul.f32 %v3175_v6, %v3175_v6  ;;  %4389 = vst [vmem:[#allocation121_spill] sm:$0xff] %v3452_v50 }
 0x2c7   :  { %1171 = vrot.lane.b32.xlu1 %v3104_v27, %s2287_s23 }
 0x2ca   :  { %1169 = vrot.lane.b32.xlu2 %v3082_v39, %s2287_s23  ;;  %v3434_v39 = vmul.f32 %v3137_v13, %v3137_v13 }
 0x2cc   :  { %1155 = vrot.lane.b32.xlu0 %v2888_v12, %s2287_s23 }
 0x2cf   :  { %1177 = vrot.lane.b32.xlu1 %v3134_v63, %s2287_s23  ;;  %v3374_v63 = vmul.f32 %v3156_v5, %v3156_v5 }
 0x2d2   :  { %1175 = vrot.lane.b32.xlu2 %v3118_v3, %s2287_s23 }
 0x2d4   :  { %1161 = vrot.lane.b32.xlu0 %v2910_v56, %s2287_s23  ;;  %v3398_v56 = vmul.f32 %v3184_v44, %v3184_v44  ;;  %v3420_v44 = vmul.f32 %v3192_v41, %v3192_v41 }
 0x2d6   :  { %4383 = vst [vmem:[#allocation115_spill] sm:$0xff] %v3398_v56 }
 0x2d7   :  { %1263 = vrot.lane.b32.xlu1 %v3354_v25, %s2285_s21 }
 0x2da   :  { %1261 = vrot.lane.b32.xlu2 %v3360_v32, %s2285_s21 }
 0x2dc   :  { %1167 = vrot.lane.b32.xlu0 %v2947_v4, %s2287_s23 }
 0x2df   :  { %1269 = vrot.lane.b32.xlu1 %v3368_v17, %s2285_s21 }
 0x2e2   :  { %1267 = vrot.lane.b32.xlu2 %v3374_v63, %s2285_s21 }
 0x2e4   :  { %v3384_v12 = vpop.permute.xlu2 %1073  ;;  %1173 = vrot.lane.b32.xlu0 %v2998_v15, %s2287_s23  ;;  %v3406_v15 = vmul.f32 %v3180_v61, %v3180_v61 }
 0x2e6   :  { %4385 = vst [vmem:[#allocation117_spill] sm:$0xff] %v3406_v15 }
 0x2e7   :  { %1275 = vrot.lane.b32.xlu1 %v3382_v2, %s2285_s21 }
 0x2ea   :  { %1273 = vrot.lane.b32.xlu2 %v3390_v45, %s2285_s21 }
 0x2ec   :  { %v3400_v6 = vpop.permute.xlu2 %1079  ;;  %1179 = vrot.lane.b32.xlu0 %v3048_v23, %s2287_s23 }
 0x2ed   :  { %4384 = vst [vmem:[#allocation116_spill] sm:$0xff] %v3400_v6  ;;  %v4445_v6 = vld [vmem:[#allocation73_spill] sm:$0xff] }
 0x2ef   :  { %1281 = vrot.lane.b32.xlu1 %v3398_v56, %s2285_s21 }
 0x2f1   :  { %v3414_v60 = vpop.permute.xlu1 %1069 }
 0x2f2   :  { %1279 = vrot.lane.b32.xlu2 %v3406_v15, %s2285_s21 }
 0x2f4   :  { %v3422_v4 = vpop.permute.xlu2 %1085  ;;  %1265 = vrot.lane.b32.xlu0 %v3412_v35, %s2285_s21 }
 0x2f5   :  { %4386 = vst [vmem:[#allocation118_spill] sm:$0xff] %v3422_v4  ;;  %v4439_v4 = vld [vmem:[#allocation35_spill] sm:$0xff] }
 0x2f7   :  { %1287 = vrot.lane.b32.xlu1 %v3420_v44, %s2285_s21 }
 0x2f9   :  { %v3436_v23 = vpop.permute.xlu1 %1075 }
 0x2fa   :  { %4387 = vst [vmem:[#allocation119_spill] sm:$0xff] %v3436_v23  ;;  %1285 = vrot.lane.b32.xlu2 %v3428_v10, %s2285_s21 }
 0x2fc   :  { %v3440_v27 = vpop.permute.xlu2 %1091  ;;  %1271 = vrot.lane.b32.xlu0 %v3434_v39, %s2285_s21 }
 0x2fd   :  { %4388 = vst [vmem:[#allocation120_spill] sm:$0xff] %v3440_v27 }
 0x2ff   :  { %1341 = vrot.lane.b32.xlu1 %v2853_v37, %s2289_s24 }
 0x301   :  { %v3454_v3 = vpop.permute.xlu1 %1081 }
 0x302   :  { %4390 = vst [vmem:[#allocation122_spill] sm:$0xff] %v3454_v3  ;;  %1291 = vrot.lane.b32.xlu2 %v3446_v7, %s2285_s21  ;;  %v4442_v3 = vld [vmem:[#allocation69_spill] sm:$0xff] }
 0x304   :  { %v1098_v13 = vpop.permute.xlu2 %1097  ;;  %1277 = vrot.lane.b32.xlu0 %v3452_v50, %s2285_s21 }
 0x307   :  { %1347 = vrot.lane.b32.xlu1 %v2865_v59, %s2289_s24  ;;  %v3480_v59 = vmul.f32 %v3172_v33, %v3172_v33 }
 0x309   :  { %v3466_v37 = vpop.permute.xlu1 %1087 }
 0x30a   :  { %4391 = vst [vmem:[#allocation123_spill] sm:$0xff] %v3466_v37  ;;  %1345 = vrot.lane.b32.xlu2 %v2915_v9, %s2289_s24 }
 0x30c   :  { %v3470_v48 = vpop.permute.xlu2 %1151  ;;  %1283 = vrot.lane.b32.xlu0 %v3464_v19, %s2285_s21 }
 0x30e   :  { %v3474_v5 = vpop.permute.xlu0 %1071 }
 0x30f   :  { %1353 = vrot.lane.b32.xlu1 %v2884_v28, %s2289_s24 }
 0x311   :  { %v3482_v57 = vpop.permute.xlu1 %1093 }
 0x312   :  { %4392 = vst [vmem:[#allocation124_spill] sm:$0xff] %v3482_v57  ;;  %1351 = vrot.lane.b32.xlu2 %v2958_v52, %s2289_s24 }
 0x314   :  { %v3486_v9 = vpop.permute.xlu2 %1157  ;;  %1289 = vrot.lane.b32.xlu0 %v3480_v59, %s2285_s21 }
 0x315   :  { %4393 = vst [vmem:[#allocation125_spill] sm:$0xff] %v3486_v9  ;;  %v4459_v9 = vld [vmem:[#allocation27_spill] sm:$0xff] }
 0x316   :  { %v3490_v42 = vpop.permute.xlu0 %1077 }
 0x317   :  { %4394 = vst [vmem:[#allocation126_spill] sm:$0xff] %v3490_v42  ;;  %1359 = vrot.lane.b32.xlu1 %v2906_v16, %s2289_s24 }
 0x319   :  { %v3494_v28 = vpop.permute.xlu1 %1099 }
 0x31a   :  { %1357 = vrot.lane.b32.xlu2 %v3011_v53, %s2289_s24 }
 0x31c   :  { %v3498_v33 = vpop.permute.xlu2 %1163  ;;  %1343 = vrot.lane.b32.xlu0 %v2897_v34, %s2289_s24 }
 0x31d   :  { %4395 = vst [vmem:[#allocation127_spill] sm:$0xff] %v3498_v33  ;;  %v4441_v33 = vld [vmem:[#allocation45_spill] sm:$0xff] }
 0x31e   :  { %v3502_v52 = vpop.permute.xlu0 %1083 }
 0x31f   :  { %4396 = vst [vmem:[#allocation128_spill] sm:$0xff] %v3502_v52  ;;  %1365 = vrot.lane.b32.xlu1 %v2943_v58, %s2289_s24 }
 0x321   :  { %v3506_v61 = vpop.permute.xlu1 %1153 }
 0x322   :  { %1363 = vrot.lane.b32.xlu2 %v3061_v46, %s2289_s24  ;;  %v1407_v46 = vsub.f32 1.0, %v2952_v1  ;;  %v1409_v1 = vsub.f32 1.0, %v2972_v51 }
 0x324   :  { %v3510_v16 = vpop.permute.xlu2 %1169  ;;  %1349 = vrot.lane.b32.xlu0 %v2927_v11, %s2289_s24  ;;  %v1406_v11 = vsub.f32 1.0, %v2922_v21 }
 0x325   :  { %4397 = vst [vmem:[#allocation129_spill] sm:$0xff] %v3510_v16 }
 0x326   :  { %v3514_v53 = vpop.permute.xlu0 %1089 }
 0x327   :  { %4398 = vst [vmem:[#allocation130_spill] sm:$0xff] %v3514_v53  ;;  %1371 = vrot.lane.b32.xlu1 %v2994_v14, %s2289_s24 }
 0x329   :  { %v3518_v34 = vpop.permute.xlu1 %1159 }
 0x32a   :  { %4399 = vst [vmem:[#allocation131_spill] sm:$0xff] %v3518_v34  ;;  %1369 = vrot.lane.b32.xlu2 %v3100_v8, %s2289_s24  ;;  %v1410_v8 = vsub.f32 1.0, %v3004_v49  ;;  %v3554_v49 = vld [vmem:[#allocation5 + $0x70] sm:$0xff] }
 0x32b   :  { %v235_v51 = vmul.f32 %v3554_v49, %v4407_v47 }
 0x32c   :  { %v3522_v58 = vpop.permute.xlu2 %1175  ;;  %1355 = vrot.lane.b32.xlu0 %v2977_v38, %s2289_s24 }
 0x32d   :  { %4400 = vst [vmem:[#allocation132_spill] sm:$0xff] %v3522_v58  ;;  %v4412_v58 = vld [vmem:[#allocation82_spill] sm:$0xff] }
 0x32e   :  { %v3527_v41 = vpop.permute.xlu0 %1095  ;;  %v1416_v47 = vsub.f32 1.0, %v4412_v58 }
 0x32f   :  { %4401 = vst [vmem:[#allocation133_spill] sm:$0xff] %v3527_v41  ;;  %1441 = vrot.lane.b32.xlu1 %v1407_v46, %s2289_s24  ;;  %v4409_v46 = vld [vmem:[#allocation60_spill] sm:$0xff] }
 0x331   :  { %v3531_v29 = vpop.permute.xlu1 %1165 }
 0x332   :  { %4402 = vst [vmem:[#allocation134_spill] sm:$0xff] %v3531_v29  ;;  %1439 = vrot.lane.b32.xlu2 %v1406_v11, %s2289_s24  ;;  %v1405_v11 = vsub.f32 1.0, %v4409_v46  ;;  %v4440_v29 = vld [vmem:[#allocation65_spill] sm:$0xff] }
 0x334   :  { %v3534_v14 = vpop.permute.xlu2 %1261  ;;  %1361 = vrot.lane.b32.xlu0 %v3030_v40, %s2289_s24 }
 0x336   :  { %v3539_v38 = vpop.permute.xlu0 %1149 }
 0x337   :  { %1447 = vrot.lane.b32.xlu1 %v1410_v8, %s2289_s24  ;;  %v4410_v8 = vld [vmem:[#allocation108_spill] sm:$0xff] }
 0x339   :  { %v3543_v31 = vpop.permute.xlu1 %1171 }
 0x33a   :  { %4403 = vst [vmem:[#allocation135_spill] sm:$0xff] %v3543_v31  ;;  %1445 = vrot.lane.b32.xlu2 %v1409_v1, %s2289_s24  ;;  %v939_v1 = vadd.f32 %v4410_v8, %v235_v51  ;;  %v4415_v51 = vld [vmem:[#allocation80_spill] sm:$0xff]  ;;  %v4429_v31 = vld [vmem:[#allocation101_spill] sm:$0xff] }
 0x33b   :  { %v1415_v46 = vsub.f32 1.0, %v4415_v51 }
 0x33c   :  { %v3546_v21 = vpop.permute.xlu2 %1267  ;;  %1367 = vrot.lane.b32.xlu0 %v4405_v24, %s2289_s24  ;;  %v1131_v0 = vadd.f32 %v1098_v13, %v939_v1 }
 0x33d   :  { %4404 = vst [vmem:[#allocation136_spill] sm:$0xff] %v3546_v21 }
 0x33e   :  { %v3551_v40 = vpop.permute.xlu0 %1155 }
 0x33f   :  { %1453 = vrot.lane.b32.xlu1 %v1413_v54, %s2289_s24 }
 0x341   :  { %v1178_v22 = vpop.permute.xlu1 %1177 }
 0x342   :  { %1451 = vrot.lane.b32.xlu2 %v1412_v20, %s2289_s24  ;;  %v1211_v24 = vsub.f32 %v3554_v49, %v1178_v22  ;;  %v4416_v22 = vld [vmem:[#allocation62_spill] sm:$0xff] }
 0x343   :  { %v1408_v13 = vsub.f32 1.0, %v4416_v22 }
 0x344   :  { %v1227_v41 = vmul.f32 %v1211_v24, %v3480_v59  ;;  %v3564_v54 = vpop.permute.xlu2 %1273  ;;  %1437 = vrot.lane.b32.xlu0 %v1405_v11, %s2289_s24  ;;  %v4418_v11 = vld [vmem:[#allocation86_spill] sm:$0xff] }
 0x345   :  { %4411 = vst [vmem:[#allocation81_spill] sm:$0xff] %v3564_v54  ;;  %v1419_v58 = vsub.f32 1.0, %v4418_v11  ;;  %v4426_v11 = vld [vmem:[#allocation67_spill] sm:$0xff] }
 0x346   :  { %v3568_v57 = vpop.permute.xlu0 %1161  ;;  %v3570_v26 = vadd.f32 %v1227_v41, %v1131_v0  ;;  %v4420_v41 = vld [vmem:[#allocation85_spill] sm:$0xff] }
 0x347   :  { %4413 = vst [vmem:[#allocation77_spill] sm:$0xff] %v3568_v57  ;;  %1459 = vrot.lane.b32.xlu1 %v1416_v47, %s2289_s24  ;;  %v1418_v24 = vsub.f32 1.0, %v4420_v41  ;;  %v4422_v47 = vld [vmem:[#allocation64_spill] sm:$0xff]  ;;  %v4428_v41 = vld [vmem:[#allocation26_spill] sm:$0xff] }
 0x348   :  { %4414 = vst [vmem:[#allocation25_spill] sm:$0xff] %v3570_v26  ;;  %v1411_v51 = vsub.f32 1.0, %v4422_v47  ;;  %v1414_v26 = vsub.f32 1.0, %v4426_v11  ;;  %v4431_v11 = vld [vmem:[#allocation71_spill] sm:$0xff] }
 0x349   :  { %v3574_v20 = vpop.permute.xlu1 %1263 }
 0x34a   :  { %1457 = vrot.lane.b32.xlu2 %v1415_v46, %s2289_s24 }
 0x34c   :  { %v3578_v8 = vpop.permute.xlu2 %1279  ;;  %1443 = vrot.lane.b32.xlu0 %v1408_v13, %s2289_s24 }
 0x34d   :  { %4417 = vst [vmem:[#allocation74_spill] sm:$0xff] %v3578_v8 }
 0x34e   :  { %v3582_v1 = vpop.permute.xlu0 %1167 }
 0x34f   :  { %4419 = vst [vmem:[#allocation60_spill] sm:$0xff] %v3582_v1  ;;  %1465 = vrot.lane.b32.xlu1 %v1419_v58, %s2289_s24  ;;  %v3601_v58 = vld [vmem:[#allocation5 + $0x78] sm:$0xff] }
 0x350   :  { %v236_v47 = vmul.f32 %v3601_v58, %v4428_v41 }
 0x351   :  { %v3586_v0 = vpop.permute.xlu1 %1269 }
 0x352   :  { %4421 = vst [vmem:[#allocation108_spill] sm:$0xff] %v3586_v0  ;;  %1463 = vrot.lane.b32.xlu2 %v1418_v24, %s2289_s24 }
 0x354   :  { %v3590_v22 = vpop.permute.xlu2 %1285  ;;  %1449 = vrot.lane.b32.xlu0 %v1411_v51, %s2289_s24 }
 0x355   :  { %4423 = vst [vmem:[#allocation82_spill] sm:$0xff] %v3590_v22  ;;  %v940_v22 = vadd.f32 %v4429_v31, %v236_v47  ;;  %v4434_v31 = vld [vmem:[#allocation76_spill] sm:$0xff] }
 0x356   :  { %v3593_v46 = vpop.permute.xlu0 %1173  ;;  %v1420_v47 = vsub.f32 1.0, %v4434_v31 }
 0x357   :  { %4424 = vst [vmem:[#allocation80_spill] sm:$0xff] %v3593_v46  ;;  %v1132_v46 = vadd.f32 %v3494_v28, %v940_v22 }
 0x359   :  { %v3595_v13 = vpop.permute.xlu1 %1275 }
 0x35a   :  { %4425 = vst [vmem:[#allocation62_spill] sm:$0xff] %v3595_v13 }
 0x35c   :  { %v3598_v27 = vpop.permute.xlu2 %1291  ;;  %1455 = vrot.lane.b32.xlu0 %v1414_v26, %s2289_s24 }
 0x35d   :  { %4427 = vst [vmem:[#allocation86_spill] sm:$0xff] %v3598_v27  ;;  %v1417_v27 = vsub.f32 1.0, %v4431_v11 }
 0x35e   :  { %v1180_v24 = vpop.permute.xlu0 %1179 }
 0x35f   :  { %v1212_v51 = vsub.f32 %v3601_v58, %v1180_v24 }
 0x361   :  { %v1228_v53 = vmul.f32 %v1212_v51, %v3446_v7  ;;  %v3609_v8 = vpop.permute.xlu1 %1281 }
 0x362   :  { %4430 = vst [vmem:[#allocation85_spill] sm:$0xff] %v3609_v8 }
 0x363   :  { %v3612_v16 = vadd.f32 %v1228_v53, %v1132_v46 }
 0x364   :  { %v1346_v26 = vpop.permute.xlu2 %1345  ;;  %1461 = vrot.lane.b32.xlu0 %v1417_v27, %s2289_s24 }
 0x365   :  { %4432 = vst [vmem:[#allocation64_spill] sm:$0xff] %v3612_v16 }
 0x366   :  { %v3615_v37 = vpop.permute.xlu0 %1265 }
 0x369   :  { %v3617_v41 = vpop.permute.xlu1 %1287 }
 0x36a   :  { %4433 = vst [vmem:[#allocation67_spill] sm:$0xff] %v3617_v41 }
 0x36c   :  { %v1352_v24 = vpop.permute.xlu2 %1351  ;;  %1467 = vrot.lane.b32.xlu0 %v1420_v47, %s2289_s24 }
 0x36e   :  { %v3621_v28 = vpop.permute.xlu0 %1271 }
 0x36f   :  { %4435 = vst [vmem:[#allocation26_spill] sm:$0xff] %v3621_v28 }
 0x371   :  { %v1342_v22 = vpop.permute.xlu1 %1341 }
 0x374   :  { %v1358_v51 = vpop.permute.xlu2 %1357 }
 0x376   :  { %v3623_v8 = vpop.permute.xlu0 %1277 }
 0x377   :  { %4436 = vst [vmem:[#allocation101_spill] sm:$0xff] %v3623_v8 }
 0x379   :  { %v3625_v53 = vpop.permute.xlu1 %1347 }
 0x37c   :  { %v1364_v46 = vpop.permute.xlu2 %1363 }
 0x37e   :  { %v3627_v11 = vpop.permute.xlu0 %1283 }
 0x37f   :  { %4437 = vst [vmem:[#allocation71_spill] sm:$0xff] %v3627_v11 }
 0x381   :  { %v3629_v27 = vpop.permute.xlu1 %1353 }
 0x384   :  { %v3631_v16 = vpop.permute.xlu2 %1369 }
 0x386   :  { %v3633_v41 = vpop.permute.xlu0 %1289 }
 0x387   :  { %4438 = vst [vmem:[#allocation76_spill] sm:$0xff] %v3633_v41 }
 0x389   :  { %v3635_v31 = vpop.permute.xlu1 %1359 }
 0x38c   :  { %v1440_v47 = vpop.permute.xlu2 %1439 }
 0x38e   :  { %v1344_v1 = vpop.permute.xlu0 %1343 }
 0x38f   :  { %vm1390_vm1 = vcmp.ge.f32.partialorder %v4439_v4, %v1344_v1  ;;  %v4443_v1 = vld [vmem:[#allocation51_spill] sm:$0xff] }
 0x390   :  { %v1486_v13 = vsel %vm1390_vm1, %v1440_v47, 0.0  ;;  %v4444_v47 = vld [vmem:[#allocation38_spill] sm:$0xff]  ;;  %vm2061_vm1 = vcmask 7168  }
 0x391   :  { %v3639_v8 = vmul.f32 %v1486_v13, %v4440_v29  ;;  %v3641_v52 = vpop.permute.xlu1 %1365  ;;  %vm1391_vm4 = vcmp.ge.f32.partialorder %v4444_v47, %v1346_v26  ;;  %v4448_v26 = vld [vmem:[#allocation42_spill] sm:$0xff] }
 0x392   :  { %vm1394_vm6 = vcmp.ge.f32.partialorder %v4448_v26, %v1352_v24  ;;  %v4452_v24 = vld [vmem:[#allocation50_spill] sm:$0xff] }
 0x393   :  { %1775 = vrot.lane.b32.xlu1 %v3639_v8, %s2287_s23  ;;  %vm1397_vm8 = vcmp.ge.f32.partialorder %v4452_v24, %v1358_v51  ;;  %v4457_v24 = vld [vmem:[#allocation53_spill] sm:$0xff] }
 0x394   :  { %v1446_v11 = vpop.permute.xlu2 %1445  ;;  %vm1400_vm10 = vcmp.ge.f32.partialorder %v4457_v24, %v1364_v46 }
 0x396   :  { %v1350_v54 = vpop.permute.xlu0 %1349 }
 0x397   :  { %vm1393_vm2 = vcmp.ge.f32.partialorder %v4441_v33, %v1350_v54 }
 0x398   :  { %v1489_v41 = vsel %vm1393_vm2, %v1446_v11, 0.0  ;;  %v4446_v11 = vld [vmem:[#allocation68_spill] sm:$0xff] }
 0x399   :  { %v3647_v28 = vmul.f32 %v1489_v41, %v4442_v3  ;;  %v3649_v57 = vpop.permute.xlu1 %1371 }
 0x39b   :  { %1781 = vrot.lane.b32.xlu1 %v3647_v28, %s2287_s23 }
 0x39c   :  { %v1452_v4 = vpop.permute.xlu2 %1451 }
 0x39e   :  { %v1356_v29 = vpop.permute.xlu0 %1355 }
 0x39f   :  { %vm1396_vm3 = vcmp.ge.f32.partialorder %v4443_v1, %v1356_v29  ;;  %v4447_v29 = vld [vmem:[#allocation54_spill] sm:$0xff] }
 0x3a0   :  { %v1492_v13 = vsel %vm1396_vm3, %v1452_v4, 0.0 }
 0x3a1   :  { %v3656_v0 = vmul.f32 %v1492_v13, %v4445_v6  ;;  %v1442_v33 = vpop.permute.xlu1 %1441  ;;  %v4449_v6 = vld [vmem:[#allocation79_spill] sm:$0xff] }
 0x3a2   :  { %v1487_v54 = vsel %vm1391_vm4, %v1442_v33, 0.0  ;;  %v4450_v33 = vld [vmem:[#allocation72_spill] sm:$0xff] }
 0x3a3   :  { %v3659_v3 = vmul.f32 %v1487_v54, %v4446_v11  ;;  %1787 = vrot.lane.b32.xlu1 %v3656_v0, %s2287_s23 }
 0x3a4   :  { %v1458_v41 = vpop.permute.xlu2 %1457 }
 0x3a5   :  { %1777 = vrot.lane.b32.xlu0 %v3659_v3, %s2287_s23 }
 0x3a6   :  { %v1362_v34 = vpop.permute.xlu0 %1361 }
 0x3a7   :  { %vm1399_vm5 = vcmp.ge.f32.partialorder %v4447_v29, %v1362_v34  ;;  %v4451_v34 = vld [vmem:[#allocation57_spill] sm:$0xff]  ;;  %v4453_v29 = vld [vmem:[#allocation84_spill] sm:$0xff] }
 0x3a8   :  { %v1495_v4 = vsel %vm1399_vm5, %v1458_v41, 0.0 }
 0x3a9   :  { %v3668_v1 = vmul.f32 %v1495_v4, %v4449_v6  ;;  %v1448_v13 = vpop.permute.xlu1 %1447 }
 0x3aa   :  { %v1490_v47 = vsel %vm1394_vm6, %v1448_v13, 0.0  ;;  %v4454_v13 = vld [vmem:[#allocation78_spill] sm:$0xff] }
 0x3ab   :  { %v3671_v54 = vmul.f32 %v1490_v47, %v4450_v33  ;;  %1793 = vrot.lane.b32.xlu1 %v3668_v1, %s2287_s23  ;;  %v4455_v33 = vld [vmem:[#allocation36_spill] sm:$0xff] }
 0x3ac   :  { %v1464_v42 = vpop.permute.xlu2 %1463  ;;  %vm1389_vm9 = vcmp.ge.f32.partialorder %v4455_v33, %v1342_v22  ;;  %v4460_v22 = vld [vmem:[#allocation40_spill] sm:$0xff] }
 0x3ad   :  { %1783 = vrot.lane.b32.xlu0 %v3671_v54, %s2287_s23  ;;  %vm1392_vm11 = vcmp.ge.f32.partialorder %v4460_v22, %v3625_v53 }
 0x3ae   :  { %v1368_v11 = vpop.permute.xlu0 %1367 }
 0x3af   :  { %vm1402_vm7 = vcmp.ge.f32.partialorder %v4451_v34, %v1368_v11  ;;  %v4456_v34 = vld [vmem:[#allocation59_spill] sm:$0xff] }
 0x3b0   :  { %v1498_v41 = vsel %vm1402_vm7, %v1464_v42, 0.0 }
 0x3b1   :  { %v3680_v4 = vmul.f32 %v1498_v41, %v4453_v29  ;;  %v1454_v26 = vpop.permute.xlu1 %1453 }
 0x3b2   :  { %v1493_v6 = vsel %vm1397_vm8, %v1454_v26, 0.0 }
 0x3b3   :  { %v3683_v47 = vmul.f32 %v1493_v6, %v4454_v13  ;;  %1799 = vrot.lane.b32.xlu1 %v3680_v4, %s2287_s23  ;;  %v4458_v6 = vld [vmem:[#allocation83_spill] sm:$0xff] }
 0x3b5   :  { %1789 = vrot.lane.b32.xlu0 %v3683_v47, %s2287_s23 }
 0x3b6   :  { %v1438_v11 = vpop.permute.xlu0 %1437 }
 0x3b7   :  { %v1485_v42 = vsel %vm1389_vm9, %v1438_v11, 0.0  ;;  %v4461_v11 = vld [vmem:[#allocation100_spill] sm:$0xff] }
 0x3b8   :  { %v1501_v51 = vmul.f32 %v1485_v42, %v4456_v34  ;;  %v4462_v34 = vld [vmem:[#allocation61_spill] sm:$0xff] }
 0x3b9   :  { %v1460_v41 = vpop.permute.xlu1 %1459 }
 0x3ba   :  { %v1517_v29 = vmul.f32 5.0, %v1501_v51  ;;  %v1496_v26 = vsel %vm1400_vm10, %v1460_v41, 0.0  ;;  %1773 = vrot.lane.b32.xlu2 %v1501_v51, %s2287_s23  ;;  %v1629_v21 = vmul.f32 2.0, %v1501_v51  ;;  %v4463_v41 = vld [vmem:[#allocation56_spill] sm:$0xff] }
 0x3bb   :  { %v3694_v13 = vmul.f32 %v1496_v26, %v4458_v6  ;;  %vm1403_vm12 = vcmp.ge.f32.partialorder %v4463_v41, %v3631_v16  ;;  %v1518_v6 = vmul.f32 5.0, %v3639_v8 }
 0x3bc   :  { %v1533_v23 = vmul.f32 %v1517_v29, %v4459_v9  ;;  %v1645_v42 = vmul.f32 %v1629_v21, %v4461_v11  ;;  %v4464_v29 = vld [vmem:[#allocation87_spill] sm:$0xff]  ;;  %v4465_v21 = vld [vmem:[#allocation48_spill] sm:$0xff] }
 0x3bd   :  { %1795 = vrot.lane.b32.xlu0 %v3694_v13, %s2287_s23  ;;  %vm1395_vm13 = vcmp.ge.f32.partialorder %v4465_v21, %v3629_v27 }
 0x3be   :  { %1565 = vrot.lane.b32.xlu1 %v1533_v23, %s2284_s1  ;;  %v1444_v46 = vpop.permute.xlu0 %1443  ;;  %v1631_v23 = vmul.f32 2.0, %v3659_v3  ;;  %v1661_v53 = vmul.f32 %v1645_v42, %v4461_v11  ;;  %v1630_v11 = vmul.f32 2.0, %v3639_v8  ;;  %v4468_v42 = vld [vmem:[#allocation28_spill] sm:$0xff] }
 0x3bf   :  { %v1488_v33 = vsel %vm1392_vm11, %v1444_v46, 0.0  ;;  %v4466_v46 = vld [vmem:[#allocation104_spill] sm:$0xff] }
 0x3c0   :  { %v3704_v24 = vmul.f32 %v1488_v33, %v4462_v34  ;;  %v1647_v33 = vmul.f32 %v1631_v23, %v4466_v46  ;;  %v4467_v34 = vld [vmem:[#allocation63_spill] sm:$0xff] }
 0x3c1   :  { %v1466_v51 = vpop.permute.xlu1 %1465  ;;  %v4470_v23 = vld [vmem:[#allocation111_spill] sm:$0xff] }
 0x3c2   :  { %v1499_v9 = vsel %vm1403_vm12, %v1466_v51, 0.0  ;;  %1779 = vrot.lane.b32.xlu2 %v3704_v24, %s2287_s23  ;;  %v1534_v51 = vmul.f32 %v1518_v6, %v4468_v42  ;;  %v1663_v27 = vmul.f32 %v1647_v33, %v4466_v46  ;;  %v4472_v6 = vld [vmem:[#allocation32_spill] sm:$0xff]  ;;  %v1522_v42 = vmul.f32 5.0, %v3671_v54 }
 0x3c3   :  { %v3711_v26 = vmul.f32 %v1499_v9, %v4464_v29  ;;  %v4469_v9 = vld [vmem:[#allocation52_spill] sm:$0xff] }
 0x3c4   :  { %vm1398_vm14 = vcmp.ge.f32.partialorder %v4469_v9, %v3635_v31  ;;  %v4473_v31 = vld [vmem:[#allocation55_spill] sm:$0xff] }
 0x3c5   :  { %1801 = vrot.lane.b32.xlu0 %v3711_v26, %s2287_s23  ;;  %vm1401_vm15 = vcmp.ge.f32.partialorder %v4473_v31, %v3641_v52  ;;  %v4475_v9 = vld [vmem:[#allocation31_spill] sm:$0xff]  ;;  %v4479_v31 = vld [vmem:[#allocation29_spill] sm:$0xff] }
 0x3c6   :  { %1693 = vrot.lane.b32.xlu1 %v1661_v53, %s2284_s1  ;;  %v1450_v16 = vpop.permute.xlu0 %1449  ;;  %v1646_v53 = vmul.f32 %v1630_v11, %v4470_v23 }
 0x3c7   :  { %v1491_v22 = vsel %vm1395_vm13, %v1450_v16, 0.0  ;;  %v1521_v16 = vmul.f32 5.0, %v3647_v28 }
 0x3c8   :  { %v3723_v41 = vmul.f32 %v1491_v22, %v4467_v34  ;;  %v4471_v22 = vld [vmem:[#allocation66_spill] sm:$0xff]  ;;  %v1662_v8 = vmul.f32 %v1646_v53, %v4470_v23 }
 0x3c9   :  { %v1537_v46 = vmul.f32 %v1521_v16, %v4472_v6  ;;  %v4476_v23 = vld [vmem:[#allocation58_spill] sm:$0xff]  ;;  %v4477_v16 = vld [vmem:[#allocation75_spill] sm:$0xff]  ;;  %v4478_v6 = vld [vmem:[#allocation33_spill] sm:$0xff] }
 0x3ca   :  { %1785 = vrot.lane.b32.xlu2 %v3723_v41, %s2287_s23  ;;  %vm1404_vm0 = vcmp.ge.f32.partialorder %v4476_v23, %v3649_v57  ;;  %v1524_v57 = vmul.f32 5.0, %v3656_v0  ;;  %v4482_v23 = vld [vmem:[#allocation34_spill] sm:$0xff] }
 0x3cd   :  { %1567 = vrot.lane.b32.xlu0 %v1534_v51, %s2284_s1  ;;  %v4474_v51 = vld [vmem:[#allocation70_spill] sm:$0xff] }
 0x3ce   :  { %1697 = vrot.lane.b32.xlu1 %v1663_v27, %s2284_s1  ;;  %v1456_v29 = vpop.permute.xlu0 %1455 }
 0x3cf   :  { %v1494_v21 = vsel %vm1398_vm14, %v1456_v29, 0.0  ;;  %v1538_v29 = vmul.f32 %v1522_v42, %v4475_v9  ;;  %v4480_v42 = vld [vmem:[#allocation37_spill] sm:$0xff]  ;;  %v1525_v9 = vmul.f32 5.0, %v3683_v47 }
 0x3d0   :  { %v3737_v34 = vmul.f32 %v1494_v21, %v4471_v22  ;;  %v1523_v21 = vmul.f32 5.0, %v3723_v41 }
 0x3d2   :  { %1791 = vrot.lane.b32.xlu2 %v3737_v34, %s2287_s23 }
 0x3d5   :  { %1695 = vrot.lane.b32.xlu0 %v1662_v8, %s2284_s1  ;;  %v1519_v8 = vmul.f32 5.0, %v3659_v3 }
 0x3d6   :  { %1573 = vrot.lane.b32.xlu1 %v1537_v46, %s2284_s1  ;;  %v1462_v33 = vpop.permute.xlu0 %1461  ;;  %v1539_v46 = vmul.f32 %v1523_v21, %v4478_v6  ;;  %v4483_v21 = vld [vmem:[#allocation39_spill] sm:$0xff] }
 0x3d7   :  { %v1497_v11 = vsel %vm1401_vm15, %v1462_v33, 0.0  ;;  %v1535_v33 = vmul.f32 %v1519_v8, %v4479_v31  ;;  %v1527_v8 = vmul.f32 5.0, %v3668_v1  ;;  %v4484_v6 = vld [vmem:[#allocation43_spill] sm:$0xff] }
 0x3d8   :  { %v3749_v27 = vmul.f32 %v1497_v11, %v4474_v51  ;;  %v1520_v11 = vmul.f32 5.0, %v3704_v24  ;;  %v1540_v51 = vmul.f32 %v1524_v57, %v4480_v42  ;;  %v3782_v31 = vld [vmem:[#allocation5 + $0x8] sm:$0xff] }
 0x3da   :  { %1797 = vrot.lane.b32.xlu2 %v3749_v27, %s2287_s23 }
 0x3de   :  { %1575 = vrot.lane.b32.xlu1 %v1538_v29, %s2284_s1  ;;  %v1468_v52 = vpop.permute.xlu0 %1467  ;;  %v4481_v29 = vld [vmem:[#allocation30_spill] sm:$0xff] }
 0x3df   :  { %v1500_v53 = vsel %vm1404_vm0, %v1468_v52, 0.0  ;;  %v1536_v3 = vmul.f32 %v1520_v11, %v4481_v29  ;;  %v1541_v52 = vmul.f32 %v1525_v9, %v4482_v23  ;;  %v1528_v11 = vmul.f32 5.0, %v3694_v13  ;;  %v4486_v23 = vld [vmem:[#allocation44_spill] sm:$0xff] }
 0x3e0   :  { %v3759_v22 = vmul.f32 %v1500_v53, %v4477_v16  ;;  %v1526_v53 = vmul.f32 5.0, %v3737_v34  ;;  %v1529_v29 = vmul.f32 5.0, %v3749_v27 }
 0x3e2   :  { %1803 = vrot.lane.b32.xlu2 %v3759_v22, %s2287_s23  ;;  %v1542_v16 = vmul.f32 %v1526_v53, %v4483_v21  ;;  %v3793_v53 = vld [vmem:[#allocation5] sm:$0xff] }
 0x3e6   :  { %1577 = vrot.lane.b32.xlu1 %v1539_v46, %s2284_s1  ;;  %v1543_v46 = vmul.f32 %v1527_v8, %v4484_v6  ;;  %v1632_v8 = vmul.f32 2.0, %v3704_v24 }
 0x3ea   :  { %1569 = vrot.lane.b32.xlu2 %v1535_v33, %s2284_s1 }
 0x3ee   :  { %1579 = vrot.lane.b32.xlu1 %v1540_v51, %s2284_s1  ;;  %v4485_v51 = vld [vmem:[#allocation41_spill] sm:$0xff] }
 0x3ef   :  { %v1544_v9 = vmul.f32 %v1528_v11, %v4485_v51  ;;  %v4487_v51 = vld [vmem:[#allocation103_spill] sm:$0xff] }
 0x3f2   :  { %1571 = vrot.lane.b32.xlu2 %v1536_v3, %s2284_s1 }
 0x3f6   :  { %1581 = vrot.lane.b32.xlu1 %v1541_v52, %s2284_s1  ;;  %v1545_v52 = vmul.f32 %v1529_v29, %v4486_v23  ;;  %v3808_v23 = vld [vmem:[#allocation5 + $0x18] sm:$0xff] }
 0x3fe   :  { %1583 = vrot.lane.b32.xlu1 %v1542_v16, %s2284_s1 }
 0x405   :  { %v1776_v57 = vpop.permute.xlu1 %1775 }
 0x406   :  { %v1822_v33 = vsub.f32 %v3782_v31, %v1776_v57  ;;  %1585 = vrot.lane.b32.xlu1 %v1543_v46, %s2284_s1  ;;  %v1530_v57 = vmul.f32 5.0, %v3680_v4 }
 0x408   :  { %v1838_v42 = vmul.f32 %v1822_v33, %v3354_v25  ;;  %v3800_v33 = vld [vmem:[#allocation5 + $0x10] sm:$0xff] }
 0x40a   :  { %1871 = vrot.lane.b32.xlu2 %v1838_v42, %s2285_s21 }
 0x40d   :  { %v1782_v16 = vpop.permute.xlu1 %1781 }
 0x40e   :  { %1587 = vrot.lane.b32.xlu1 %v1544_v9, %s2284_s1  ;;  %v1648_v9 = vmul.f32 %v1632_v8, %v4487_v51 }
 0x414   :  { %v1774_v3 = vpop.permute.xlu2 %1773 }
 0x415   :  { %v1821_v21 = vsub.f32 %v3793_v53, %v1774_v3  ;;  %v4488_v3 = vld [vmem:[#allocation47_spill] sm:$0xff] }
 0x416   :  { %1589 = vrot.lane.b32.xlu1 %v1545_v52, %s2284_s1  ;;  %v1546_v24 = vmul.f32 %v1530_v57, %v4488_v3  ;;  %v4489_v57 = vld [vmem:[#allocation46_spill] sm:$0xff] }
 0x417   :  { %v1837_v6 = vmul.f32 %v1821_v21, %v3360_v32  ;;  %v1778_v46 = vpop.permute.xlu0 %1777  ;;  %v1633_v21 = vmul.f32 2.0, %v3647_v28  ;;  %v1634_v28 = vmul.f32 2.0, %v3671_v54 }
 0x418   :  { %v1823_v11 = vsub.f32 %v3800_v33, %v1778_v46  ;;  %v1664_v46 = vmul.f32 %v1648_v9, %v4487_v51  ;;  %v1532_v9 = vmul.f32 5.0, %v3759_v22 }
 0x419   :  { %1869 = vrot.lane.b32.xlu0 %v1837_v6, %s2285_s21  ;;  %v1531_v6 = vmul.f32 5.0, %v3711_v26 }
 0x41a   :  { %v1839_v42 = vmul.f32 %v1823_v11, %v3412_v35  ;;  %v1788_v11 = vpop.permute.xlu1 %1787 }
 0x41b   :  { %v1547_v3 = vmul.f32 %v1531_v6, %v4489_v57  ;;  %v4491_v6 = vld [vmem:[#allocation107_spill] sm:$0xff] }
 0x41c   :  { %v1780_v29 = vpop.permute.xlu2 %1779  ;;  %1873 = vrot.lane.b32.xlu2 %v1839_v42, %s2285_s21  ;;  %v1649_v42 = vmul.f32 %v1633_v21, %v3290_v62 }
 0x41d   :  { %v1824_v52 = vsub.f32 %v3808_v23, %v1780_v29  ;;  %v3820_v29 = vld [vmem:[#allocation5 + $0x20] sm:$0xff] }
 0x41e   :  { %1591 = vrot.lane.b32.xlu1 %v1546_v24, %s2284_s1  ;;  %4490 = vst [vmem:[#allocation35_spill] sm:$0xff] %v3820_v29  ;;  %v1825_v24 = vsub.f32 %v3820_v29, %v1782_v16  ;;  %v1665_v51 = vmul.f32 %v1649_v42, %v3290_v62  ;;  %v1644_v16 = vmul.f32 2.0, %v3759_v22  ;;  %v3835_v29 = vld [vmem:[#allocation5 + $0x28] sm:$0xff]  ;;  %v1635_v42 = vmul.f32 2.0, %v3723_v41 }
 0x41f   :  { %v1840_v8 = vmul.f32 %v1824_v52, %v3374_v63  ;;  %v1784_v57 = vpop.permute.xlu0 %1783 }
 0x420   :  { %v1841_v52 = vmul.f32 %v1825_v24, %v3368_v17  ;;  %v1826_v62 = vsub.f32 %v3835_v29, %v1784_v57 }
 0x421   :  { %1699 = vrot.lane.b32.xlu0 %v1664_v46, %s2284_s1 }
 0x422   :  { %v3829_v21 = vpop.permute.xlu1 %1793  ;;  %v1842_v22 = vmul.f32 %v1826_v62, %v3434_v39 }
 0x424   :  { %1875 = vrot.lane.b32.xlu2 %v1840_v8, %s2285_s21  ;;  %v1786_v46 = vpop.permute.xlu2 %1785  ;;  %v1650_v8 = vmul.f32 %v1634_v28, %v4491_v6  ;;  %v4493_v28 = vld [vmem:[#allocation106_spill] sm:$0xff] }
 0x426   :  { %1593 = vrot.lane.b32.xlu1 %v1547_v3, %s2284_s1  ;;  %v4492_v3 = vld [vmem:[#allocation49_spill] sm:$0xff]  ;;  %v1666_v24 = vmul.f32 %v1650_v8, %v4491_v6  ;;  %v1636_v6 = vmul.f32 2.0, %v3656_v0  ;;  %v1637_v0 = vmul.f32 2.0, %v3683_v47 }
 0x427   :  { %v1548_v54 = vmul.f32 %v1532_v9, %v4492_v3  ;;  %v3849_v3 = vld [vmem:[#allocation5 + $0x30] sm:$0xff] }
 0x428   :  { %v1827_v41 = vsub.f32 %v3849_v3, %v1786_v46  ;;  %v1652_v62 = vmul.f32 %v1636_v6, %v3308_v36 }
 0x429   :  { %1701 = vrot.lane.b32.xlu0 %v1665_v51, %s2284_s1  ;;  %v1660_v51 = vmul.f32 %v1644_v16, %v3297_v30  ;;  %v1790_v16 = vpop.permute.xlu0 %1789 }
 0x42a   :  { %v3845_v17 = vpop.permute.xlu1 %1799 }
 0x42b   :  { %v1676_v57 = vmul.f32 %v1660_v51, %v3297_v30  ;;  %v3861_v30 = vld [vmem:[#allocation5 + $0x38] sm:$0xff]  ;;  %v1668_v51 = vmul.f32 %v1652_v62, %v3308_v36 }
 0x42c   :  { %1877 = vrot.lane.b32.xlu2 %v1841_v52, %s2285_s21  ;;  %v1651_v52 = vmul.f32 %v1635_v42, %v4493_v28  ;;  %v1792_v9 = vpop.permute.xlu2 %1791  ;;  %v1828_v46 = vsub.f32 %v3861_v30, %v1788_v11  ;;  %v4496_v62 = vld [vmem:[#allocation109_spill] sm:$0xff] }
 0x42e   :  { %1595 = vrot.lane.b32.xlu1 %v1548_v54, %s2284_s1  ;;  %v1667_v8 = vmul.f32 %v1651_v52, %v4493_v28  ;;  %v1843_v54 = vmul.f32 %v1827_v41, %v3390_v45  ;;  %v4494_v52 = vld [vmem:[#allocation110_spill] sm:$0xff] }
 0x42f   :  { %v3872_v41 = vld [vmem:[#allocation5 + $0x40] sm:$0xff] }
 0x430   :  { %4495 = vst [vmem:[#allocation65_spill] sm:$0xff] %v3872_v41  ;;  %v1829_v6 = vsub.f32 %v3872_v41, %v1790_v16 }
 0x431   :  { %1703 = vrot.lane.b32.xlu0 %v1666_v24, %s2284_s1  ;;  %v1796_v28 = vpop.permute.xlu0 %1795 }
 0x432   :  { %v3858_v42 = vpop.permute.xlu1 %1565 }
 0x434   :  { %1879 = vrot.lane.b32.xlu2 %v1842_v22, %s2285_s21  ;;  %v3864_v24 = vpop.permute.xlu2 %1797  ;;  %v1844_v22 = vmul.f32 %v1828_v46, %v3382_v2 }
 0x436   :  { %1723 = vrot.lane.b32.xlu1 %v1676_v57, %s2284_s1  ;;  %v1653_v57 = vmul.f32 %v1637_v0, %v4494_v52 }
 0x438   :  { %v1669_v47 = vmul.f32 %v1653_v57, %v4494_v52 }
 0x439   :  { %1705 = vrot.lane.b32.xlu0 %v1667_v8, %s2284_s1  ;;  %v1638_v8 = vmul.f32 2.0, %v3737_v34  ;;  %v3884_v0 = vpop.permute.xlu0 %1801  ;;  %v1639_v34 = vmul.f32 2.0, %v3668_v1  ;;  %v4499_v1 = vld [vmem:[#allocation12_spill] sm:$0xff] }
 0x43a   :  { %v3875_v11 = vpop.permute.xlu1 %1693 }
 0x43b   :  { %v1654_v46 = vmul.f32 %v1638_v8, %v4496_v62  ;;  %v1655_v8 = vmul.f32 %v1639_v34, %v3317_v55  ;;  %v1198_v34 = vsub.f32 %v3782_v31, %v3470_v48 }
 0x43c   :  { %1881 = vrot.lane.b32.xlu2 %v1843_v54, %s2285_s21  ;;  %v3879_v36 = vpop.permute.xlu2 %1803  ;;  %v1845_v54 = vmul.f32 %v1829_v6, %v3452_v50 }
 0x441   :  { %1707 = vrot.lane.b32.xlu0 %v1668_v51, %s2284_s1  ;;  %v3887_v51 = vld [vmem:[#allocation5 + $0x48] sm:$0xff] }
 0x442   :  { %4497 = vst [vmem:[#allocation45_spill] sm:$0xff] %v3887_v51  ;;  %v1830_v16 = vsub.f32 %v3887_v51, %v1792_v9  ;;  %v3892_v52 = vpop.permute.xlu1 %1697  ;;  %v4500_v51 = vld [vmem:[#allocation88_spill] sm:$0xff] }
 0x444   :  { %1883 = vrot.lane.b32.xlu2 %v1844_v22, %s2285_s21  ;;  %v1670_v22 = vmul.f32 %v1654_v46, %v4496_v62  ;;  %v1846_v57 = vmul.f32 %v1830_v16, %v3406_v15  ;;  %v1570_v6 = vpop.permute.xlu2 %1569  ;;  %v222_v62 = vmul.f32 %v3782_v31, %v4499_v1  ;;  %v1640_v46 = vmul.f32 2.0, %v3694_v13 }
 0x445   :  { %v1934_v13 = vsub.f32 1.0, %v3782_v31  ;;  %v4502_v31 = vld [vmem:[#allocation112_spill] sm:$0xff] }
 0x446   :  { %v926_v16 = vadd.f32 %v4500_v51, %v222_v62  ;;  %v3920_v51 = vld [vmem:[#allocation5 + $0x58] sm:$0xff] }
 0x447   :  { %v1832_v48 = vsub.f32 %v3920_v51, %v1796_v28 }
 0x449   :  { %1709 = vrot.lane.b32.xlu0 %v1669_v47, %s2284_s1  ;;  %v3898_v47 = vld [vmem:[#allocation5 + $0x50] sm:$0xff] }
 0x44a   :  { %4498 = vst [vmem:[#allocation69_spill] sm:$0xff] %v3898_v47  ;;  %v1831_v9 = vsub.f32 %v3898_v47, %v3829_v21  ;;  %v3911_v15 = vpop.permute.xlu1 %1573  ;;  %v1118_v21 = vadd.f32 %v3474_v5, %v926_v16  ;;  %v4501_v47 = vld [vmem:[#allocation113_spill] sm:$0xff] }
 0x44b   :  { %v1656_v50 = vmul.f32 %v1640_v46, %v4501_v47  ;;  %v1310_v46 = vadd.f32 %v3574_v20, %v3354_v25  ;;  %v1199_v20 = vsub.f32 %v3800_v33, %v3506_v61 }
 0x44c   :  { %1885 = vrot.lane.b32.xlu2 %v1845_v54, %s2285_s21  ;;  %v1568_v54 = vpop.permute.xlu0 %1567  ;;  %v3915_v1 = vpop.permute.xlu2 %1571 }
 0x44d   :  { %v1672_v62 = vmul.f32 %v1656_v50, %v4501_v47  ;;  %v3933_v47 = vld [vmem:[#allocation5 + $0x60] sm:$0xff] }
 0x451   :  { %1711 = vrot.lane.b32.xlu0 %v1670_v22, %s2284_s1  ;;  %v1671_v22 = vmul.f32 %v1655_v8, %v3317_v55  ;;  %v1214_v55 = vmul.f32 %v1198_v34, %v3354_v25  ;;  %v1641_v8 = vmul.f32 2.0, %v3749_v27  ;;  %v1848_v34 = vmul.f32 %v1832_v48, %v3464_v19 }
 0x452   :  { %v3930_v41 = vpop.permute.xlu1 %1575  ;;  %v1833_v25 = vsub.f32 %v3933_v47, %v3864_v24 }
 0x454   :  { %1887 = vrot.lane.b32.xlu2 %v1846_v57, %s2285_s21  ;;  %v1847_v57 = vmul.f32 %v1831_v9, %v3398_v56  ;;  %v1230_v9 = vadd.f32 %v1214_v55, %v1118_v21  ;;  %v1696_v5 = vpop.permute.xlu0 %1695 }
 0x456   :  { %v1614_v16 = vadd.f32 %v1568_v54, %v1230_v9  ;;  %v1642_v54 = vmul.f32 2.0, %v3680_v4  ;;  %v3950_v4 = vld [vmem:[#allocation5 + $0x68] sm:$0xff] }
 0x458   :  { %v1742_v56 = vadd.f32 %v1696_v5, %v1614_v16  ;;  %v1658_v24 = vmul.f32 %v1642_v54, %v3329_v43  ;;  %v1834_v5 = vsub.f32 %v3950_v4, %v3845_v17  ;;  %v1643_v16 = vmul.f32 2.0, %v3711_v26 }
 0x459   :  { %1713 = vrot.lane.b32.xlu0 %v1671_v22, %s2284_s1  ;;  %v1950_v22 = vmul.f32 0.5, %v1934_v13  ;;  %v4503_v13 = vld [vmem:[#allocation13_spill] sm:$0xff]  ;;  %v1836_v26 = vsub.f32 %v3601_v58, %v3879_v36  ;;  %v1197_v36 = vsub.f32 %v3793_v53, %v3539_v38 }
 0x45a   :  { %v223_v48 = vmul.f32 %v3800_v33, %v4503_v13  ;;  %v1659_v17 = vmul.f32 %v1643_v16, %v3303_v18  ;;  %v4505_v13 = vld [vmem:[#allocation11_spill] sm:$0xff]  ;;  %v4507_v16 = vld [vmem:[#allocation14_spill] sm:$0xff] }
 0x45b   :  { %v1966_v27 = vmul.f32 %v1950_v22, %v1310_v46  ;;  %v3954_v22 = vpop.permute.xlu1 %1577  ;;  %v1935_v46 = vsub.f32 1.0, %v3800_v33 }
 0x45c   :  { %1889 = vrot.lane.b32.xlu2 %v1847_v57, %s2285_s21  ;;  %v1657_v57 = vmul.f32 %v1641_v8, %v4502_v31  ;;  %v4504_v8 = vld [vmem:[#allocation96_spill] sm:$0xff] }
 0x45d   :  { %v927_v9 = vadd.f32 %v4504_v8, %v223_v48  ;;  %v4506_v48 = vld [vmem:[#allocation89_spill] sm:$0xff]  ;;  %v1213_v8 = vmul.f32 %v1197_v36, %v3360_v32 }
 0x45e   :  { %v1673_v55 = vmul.f32 %v1657_v57, %v4502_v31  ;;  %v1674_v31 = vmul.f32 %v1658_v24, %v3329_v43 }
 0x45f   :  { %v1119_v61 = vadd.f32 %v3384_v12, %v927_v9  ;;  %v1951_v12 = vmul.f32 0.5, %v1935_v46 }
 0x461   :  { %1715 = vrot.lane.b32.xlu0 %v1672_v62, %s2284_s1  ;;  %v1215_v62 = vmul.f32 %v1199_v20, %v3412_v35 }
 0x463   :  { %v3969_v20 = vpop.permute.xlu1 %1579 }
 0x464   :  { %v1872_v28 = vpop.permute.xlu2 %1871  ;;  %1891 = vrot.lane.b32.xlu2 %v1848_v34, %s2285_s21  ;;  %v1231_v34 = vadd.f32 %v1215_v62, %v1119_v61  ;;  %v1309_v61 = vadd.f32 %v3534_v14, %v3360_v32  ;;  %v4509_v14 = vld [vmem:[#allocation119_spill] sm:$0xff] }
 0x465   :  { %v1918_v50 = vadd.f32 %v1872_v28, %v1742_v56  ;;  %v1849_v56 = vmul.f32 %v1833_v25, %v3428_v10  ;;  %v1850_v28 = vmul.f32 %v1834_v5, %v3420_v44  ;;  %v1675_v25 = vmul.f32 %v1659_v17, %v3303_v18 }
 0x466   :  { %v1615_v57 = vadd.f32 %v1570_v6, %v1231_v34  ;;  %v221_v18 = vmul.f32 %v3793_v53, %v4505_v13  ;;  %v1200_v5 = vsub.f32 %v3808_v23, %v3551_v40  ;;  %v4515_v13 = vld [vmem:[#allocation126_spill] sm:$0xff] }
 0x467   :  { %v1982_v21 = vadd.f32 %v1966_v27, %v1918_v50  ;;  %v1311_v27 = vadd.f32 %v3615_v37, %v3412_v35  ;;  %v1852_v35 = vmul.f32 %v1836_v26, %v3446_v7  ;;  %v1835_v37 = vsub.f32 %v3554_v49, %v3884_v0  ;;  %v4511_v26 = vld [vmem:[#allocation35_spill] sm:$0xff] }
 0x468   :  { %v1743_v33 = vadd.f32 %v3892_v52, %v1615_v57  ;;  %v1933_v0 = vsub.f32 1.0, %v3793_v53 }
 0x469   :  { %1717 = vrot.lane.b32.xlu0 %v1673_v55, %s2284_s1  ;;  %v1967_v43 = vmul.f32 %v1951_v12, %v1311_v27  ;;  %v1851_v55 = vmul.f32 %v1835_v37, %v3480_v59  ;;  %v1216_v12 = vmul.f32 %v1200_v5, %v3374_v63  ;;  %v4514_v37 = vld [vmem:[#allocation136_spill] sm:$0xff]  ;;  %v4517_v5 = vld [vmem:[#allocation131_spill] sm:$0xff] }
 0x46a   :  { %v1949_v24 = vmul.f32 0.5, %v1933_v0  ;;  %v1312_v36 = vadd.f32 %v4514_v37, %v3374_v63  ;;  %v1937_v0 = vsub.f32 1.0, %v4511_v26 }
 0x46b   :  { %v3984_v9 = vpop.permute.xlu1 %1581 }
 0x46c   :  { %1893 = vrot.lane.b32.xlu2 %v1849_v56, %s2285_s21  ;;  %v925_v56 = vadd.f32 %v4506_v48, %v221_v18 }
 0x46e   :  { %v1117_v49 = vadd.f32 %v3414_v60, %v925_v56  ;;  %v224_v60 = vmul.f32 %v3808_v23, %v4507_v16  ;;  %v4516_v56 = vld [vmem:[#allocation114_spill] sm:$0xff] }
 0x470   :  { %v1229_v38 = vadd.f32 %v1213_v8, %v1117_v49 }
 0x471   :  { %1719 = vrot.lane.b32.xlu0 %v1674_v31, %s2284_s1  ;;  %v4508_v31 = vld [vmem:[#allocation91_spill] sm:$0xff] }
 0x472   :  { %v1613_v46 = vadd.f32 %v3858_v42, %v1229_v38  ;;  %v928_v57 = vadd.f32 %v4508_v31, %v224_v60  ;;  %v1936_v42 = vsub.f32 1.0, %v3808_v23  ;;  %v4518_v60 = vld [vmem:[#allocation17_spill] sm:$0xff] }
 0x473   :  { %v4000_v27 = vpop.permute.xlu1 %1583 }
 0x474   :  { %1895 = vrot.lane.b32.xlu2 %v1850_v28, %s2285_s21  ;;  %v1741_v53 = vadd.f32 %v3875_v11, %v1613_v46  ;;  %v1965_v28 = vmul.f32 %v1949_v24, %v1309_v61  ;;  %v1120_v40 = vadd.f32 %v4509_v14, %v928_v57  ;;  %v4512_v11 = vld [vmem:[#allocation90_spill] sm:$0xff]  ;;  %v1202_v46 = vsub.f32 %v3835_v29, %v4517_v5 }
 0x476   :  { %v1874_v50 = vpop.permute.xlu2 %1873 }
 0x477   :  { %v1919_v6 = vadd.f32 %v1874_v50, %v1743_v33  ;;  %v4510_v33 = vld [vmem:[#allocation15_spill] sm:$0xff] }
 0x478   :  { %v225_v50 = vmul.f32 %v4511_v26, %v4510_v33  ;;  %v1938_v33 = vsub.f32 1.0, %v3835_v29 }
 0x479   :  { %v1983_v54 = vadd.f32 %v1967_v43, %v1919_v6  ;;  %1721 = vrot.lane.b32.xlu0 %v1675_v25, %s2284_s1  ;;  %v1232_v43 = vadd.f32 %v1216_v12, %v1120_v40  ;;  %v4513_v25 = vld [vmem:[#allocation125_spill] sm:$0xff]  ;;  %v4520_v12 = vld [vmem:[#allocation99_spill] sm:$0xff]  ;;  %v4521_v40 = vld [vmem:[#allocation116_spill] sm:$0xff] }
 0x47a   :  { %v929_v6 = vadd.f32 %v4512_v11, %v225_v50  ;;  %v1954_v37 = vmul.f32 0.5, %v1938_v33 }
 0x47b   :  { %v4016_v38 = vpop.permute.xlu1 %1585 }
 0x47c   :  { %1899 = vrot.lane.b32.xlu2 %v1852_v35, %s2285_s21  ;;  %v1952_v35 = vmul.f32 0.5, %v1936_v42  ;;  %v1121_v18 = vadd.f32 %v4515_v13, %v929_v6 }
 0x47e   :  { %v1876_v52 = vpop.permute.xlu2 %1875  ;;  %v1968_v49 = vmul.f32 %v1952_v35, %v1312_v36  ;;  %v4524_v36 = vld [vmem:[#allocation26_spill] sm:$0xff] }
 0x481   :  { %1897 = vrot.lane.b32.xlu0 %v1851_v55, %s2285_s21  ;;  %v1616_v55 = vadd.f32 %v3915_v1, %v1232_v43  ;;  %v226_v1 = vmul.f32 %v3835_v29, %v4518_v60  ;;  %v4522_v43 = vld [vmem:[#allocation77_spill] sm:$0xff] }
 0x482   :  { %v1203_v11 = vsub.f32 %v3849_v3, %v4522_v43  ;;  %v4533_v43 = vld [vmem:[#allocation65_spill] sm:$0xff] }
 0x484   :  { %2017 = vrot.lane.b32.xlu2 %v1983_v54, %s2286_s22  ;;  %v1201_v54 = vsub.f32 %v4511_v26, %v4513_v25 }
 0x486   :  { %v1878_v62 = vpop.permute.xlu2 %1877  ;;  %v1217_v8 = vmul.f32 %v1201_v54, %v4516_v56  ;;  %v4523_v54 = vld [vmem:[#allocation16_spill] sm:$0xff] }
 0x487   :  { %v227_v35 = vmul.f32 %v3849_v3, %v4523_v54 }
 0x488   :  { %v1233_v16 = vadd.f32 %v1217_v8, %v1121_v18  ;;  %v1219_v18 = vmul.f32 %v1203_v11, %v3390_v45 }
 0x489   :  { %2015 = vrot.lane.b32.xlu0 %v1982_v21, %s2286_s22 }
 0x48a   :  { %v1617_v57 = vadd.f32 %v3911_v15, %v1233_v16  ;;  %v4032_v15 = vpop.permute.xlu1 %1587 }
 0x48b   :  { %v1870_v34 = vpop.permute.xlu0 %1869 }
 0x48c   :  { %v1917_v32 = vadd.f32 %v1870_v34, %v1741_v53  ;;  %v1953_v53 = vmul.f32 0.5, %v1937_v0  ;;  %v4519_v34 = vld [vmem:[#allocation108_spill] sm:$0xff] }
 0x48d   :  { %v1313_v31 = vadd.f32 %v4519_v34, %v4516_v56  ;;  %v4526_v56 = vld [vmem:[#allocation122_spill] sm:$0xff] }
 0x48e   :  { %v1981_v17 = vadd.f32 %v1965_v28, %v1917_v32  ;;  %v1880_v21 = vpop.permute.xlu2 %1879  ;;  %v1218_v32 = vmul.f32 %v1202_v46, %v3434_v39  ;;  %v4527_v46 = vld [vmem:[#allocation18_spill] sm:$0xff] }
 0x490   :  { %2013 = vrot.lane.b32.xlu1 %v1981_v17, %s2286_s22  ;;  %v1969_v17 = vmul.f32 %v1953_v53, %v1313_v31  ;;  %v4530_v31 = vld [vmem:[#allocation81_spill] sm:$0xff] }
 0x493   :  { %v1700_v23 = vpop.permute.xlu0 %1699 }
 0x494   :  { %v1744_v48 = vadd.f32 %v1700_v23, %v1616_v55  ;;  %v1314_v55 = vadd.f32 %v4524_v36, %v3434_v39  ;;  %v228_v39 = vmul.f32 %v3861_v30, %v4527_v46 }
 0x496   :  { %v1920_v24 = vadd.f32 %v1876_v52, %v1744_v48  ;;  %v1882_v61 = vpop.permute.xlu2 %1881  ;;  %v930_v52 = vadd.f32 %v4520_v12, %v226_v1  ;;  %v1970_v0 = vmul.f32 %v1954_v37, %v1314_v55  ;;  %v4529_v1 = vld [vmem:[#allocation127_spill] sm:$0xff]  ;;  %v4531_v12 = vld [vmem:[#allocation128_spill] sm:$0xff] }
 0x497   :  { %v1204_v53 = vsub.f32 %v3861_v30, %v4529_v1 }
 0x498   :  { %v1984_v63 = vadd.f32 %v1968_v49, %v1920_v24  ;;  %v1122_v42 = vadd.f32 %v4521_v40, %v930_v52  ;;  %v1939_v49 = vsub.f32 1.0, %v3849_v3  ;;  %v4052_v3 = vpop.permute.xlu1 %1589 }
 0x49a   :  { %2019 = vrot.lane.b32.xlu1 %v1984_v63, %s2286_s22  ;;  %v1234_v6 = vadd.f32 %v1218_v32, %v1122_v42  ;;  %v4528_v63 = vld [vmem:[#allocation92_spill] sm:$0xff]  ;;  %v1955_v34 = vmul.f32 0.5, %v1939_v49  ;;  %v1940_v42 = vsub.f32 1.0, %v3861_v30  ;;  %v4536_v30 = vld [vmem:[#allocation102_spill] sm:$0xff] }
 0x49b   :  { %v1702_v28 = vpop.permute.xlu0 %1701  ;;  %v932_v60 = vadd.f32 %v4528_v63, %v228_v39 }
 0x49c   :  { %v1745_v14 = vadd.f32 %v1702_v28, %v1617_v57  ;;  %v1618_v23 = vadd.f32 %v3930_v41, %v1234_v6  ;;  %v1315_v57 = vadd.f32 %v4530_v31, %v3390_v45  ;;  %v4534_v6 = vld [vmem:[#allocation20_spill] sm:$0xff]  ;;  %v1956_v54 = vmul.f32 0.5, %v1940_v42  ;;  %v4543_v31 = vld [vmem:[#allocation95_spill] sm:$0xff] }
 0x49d   :  { %v1124_v52 = vadd.f32 %v4531_v12, %v932_v60  ;;  %v4542_v60 = vld [vmem:[#allocation101_spill] sm:$0xff]  ;;  %v4545_v12 = vld [vmem:[#allocation123_spill] sm:$0xff] }
 0x49e   :  { %v1921_v26 = vadd.f32 %v1878_v62, %v1745_v14  ;;  %v1884_v50 = vpop.permute.xlu2 %1883  ;;  %v4525_v62 = vld [vmem:[#allocation93_spill] sm:$0xff]  ;;  %v1220_v14 = vmul.f32 %v1204_v53, %v3382_v2  ;;  %v1971_v40 = vmul.f32 %v1955_v34, %v1315_v57 }
 0x49f   :  { %v931_v13 = vadd.f32 %v4525_v62, %v227_v35  ;;  %v4535_v35 = vld [vmem:[#allocation62_spill] sm:$0xff]  ;;  %v4544_v57 = vld [vmem:[#allocation117_spill] sm:$0xff] }
 0x4a0   :  { %v1985_v25 = vadd.f32 %v1969_v17, %v1921_v26  ;;  %v4532_v26 = vld [vmem:[#allocation134_spill] sm:$0xff]  ;;  %v1236_v11 = vadd.f32 %v1220_v14, %v1124_v52  ;;  %v1316_v37 = vadd.f32 %v4535_v35, %v3382_v2  ;;  %v4068_v62 = vpop.permute.xlu1 %1591  ;;  %v4539_v2 = vld [vmem:[#allocation60_spill] sm:$0xff] }
 0x4a1   :  { %v1123_v8 = vadd.f32 %v4526_v56, %v931_v13  ;;  %v1205_v45 = vsub.f32 %v4533_v43, %v4532_v26  ;;  %v4546_v26 = vld [vmem:[#allocation21_spill] sm:$0xff] }
 0x4a2   :  { %2021 = vrot.lane.b32.xlu0 %v1985_v25, %s2286_s22  ;;  %v229_v25 = vmul.f32 %v4533_v43, %v4534_v6  ;;  %v1620_v36 = vadd.f32 %v3969_v20, %v1236_v11  ;;  %v1972_v56 = vmul.f32 %v1956_v54, %v1316_v37  ;;  %v4550_v37 = vld [vmem:[#allocation74_spill] sm:$0xff] }
 0x4a3   :  { %v1704_v29 = vpop.permute.xlu0 %1703  ;;  %v1235_v16 = vadd.f32 %v1219_v18, %v1123_v8  ;;  %v4538_v18 = vld [vmem:[#allocation118_spill] sm:$0xff]  ;;  %v1941_v8 = vsub.f32 1.0, %v4533_v43  ;;  %v4547_v43 = vld [vmem:[#allocation69_spill] sm:$0xff] }
 0x4a4   :  { %v1746_v48 = vadd.f32 %v1704_v29, %v1618_v23  ;;  %v4537_v23 = vld [vmem:[#allocation121_spill] sm:$0xff] }
 0x4a5   :  { %v1619_v28 = vadd.f32 %v3954_v22, %v1235_v16  ;;  %v1221_v29 = vmul.f32 %v1205_v45, %v4537_v23  ;;  %v4541_v16 = vld [vmem:[#allocation19_spill] sm:$0xff]  ;;  %v1957_v63 = vmul.f32 0.5, %v1941_v8  ;;  %v1317_v1 = vadd.f32 %v4542_v60, %v4537_v23 }
 0x4a6   :  { %v1922_v24 = vadd.f32 %v1880_v21, %v1746_v48  ;;  %v1886_v5 = vpop.permute.xlu2 %1885 }
 0x4a7   :  { %v1973_v14 = vmul.f32 %v1957_v63, %v1317_v1 }
 0x4a8   :  { %v1986_v41 = vadd.f32 %v1970_v0, %v1922_v24  ;;  %v4540_v24 = vld [vmem:[#allocation45_spill] sm:$0xff] }
 0x4a9   :  { %v1206_v20 = vsub.f32 %v4540_v24, %v4539_v2 }
 0x4aa   :  { %2023 = vrot.lane.b32.xlu2 %v1986_v41, %s2286_s22  ;;  %v230_v41 = vmul.f32 %v4540_v24, %v4541_v16 }
 0x4ab   :  { %v1706_v21 = vpop.permute.xlu0 %1705 }
 0x4ac   :  { %v1747_v32 = vadd.f32 %v1706_v21, %v1619_v28  ;;  %v1222_v28 = vmul.f32 %v1206_v20, %v4544_v57 }
 0x4ae   :  { %v1923_v17 = vadd.f32 %v1882_v61, %v1747_v32  ;;  %v1888_v33 = vpop.permute.xlu2 %1887  ;;  %v933_v61 = vadd.f32 %v4536_v30, %v229_v25  ;;  %v1942_v32 = vsub.f32 1.0, %v4540_v24  ;;  %v4549_v25 = vld [vmem:[#allocation129_spill] sm:$0xff]  ;;  %v4551_v30 = vld [vmem:[#allocation130_spill] sm:$0xff] }
 0x4af   :  { %v1207_v54 = vsub.f32 %v4547_v43, %v4549_v25 }
 0x4b0   :  { %v1987_v22 = vadd.f32 %v1971_v40, %v1923_v17  ;;  %v1125_v48 = vadd.f32 %v4538_v18, %v933_v61  ;;  %v4084_v40 = vpop.permute.xlu1 %1593  ;;  %v1958_v35 = vmul.f32 0.5, %v1942_v32  ;;  %v1948_v32 = vsub.f32 1.0, %v3601_v58  ;;  %v4561_v58 = vld [vmem:[#allocation86_spill] sm:$0xff] }
 0x4b2   :  { %2025 = vrot.lane.b32.xlu1 %v1987_v22, %s2286_s22  ;;  %v1237_v46 = vadd.f32 %v1221_v29, %v1125_v48  ;;  %v4548_v22 = vld [vmem:[#allocation94_spill] sm:$0xff]  ;;  %v4552_v29 = vld [vmem:[#allocation115_spill] sm:$0xff]  ;;  %v1943_v48 = vsub.f32 1.0, %v4547_v43 }
 0x4b3   :  { %v1708_v55 = vpop.permute.xlu0 %1707 }
 0x4b4   :  { %v1748_v13 = vadd.f32 %v1708_v55, %v1620_v36  ;;  %v1621_v53 = vadd.f32 %v3984_v9, %v1237_v46  ;;  %v231_v9 = vmul.f32 %v4547_v43, %v4546_v26  ;;  %v1318_v36 = vadd.f32 %v4550_v37, %v4544_v57  ;;  %v4559_v43 = vld [vmem:[#allocation23_spill] sm:$0xff] }
 0x4b5   :  { %v1959_v16 = vmul.f32 0.5, %v1943_v48  ;;  %v4565_v48 = vld [vmem:[#allocation24_spill] sm:$0xff] }
 0x4b6   :  { %v1924_v49 = vadd.f32 %v1884_v50, %v1748_v13  ;;  %v1890_v0 = vpop.permute.xlu2 %1889  ;;  %v934_v50 = vadd.f32 %v4543_v31, %v230_v41  ;;  %v935_v6 = vadd.f32 %v4548_v22, %v231_v9  ;;  %v1223_v13 = vmul.f32 %v1207_v54, %v4552_v29  ;;  %v4555_v41 = vld [vmem:[#allocation85_spill] sm:$0xff]  ;;  %v4562_v54 = vld [vmem:[#allocation64_spill] sm:$0xff] }
 0x4b7   :  { %v1974_v18 = vmul.f32 %v1958_v35, %v1318_v36  ;;  %v1319_v63 = vadd.f32 %v4555_v41, %v4552_v29  ;;  %v233_v9 = vmul.f32 %v3933_v47, %v4559_v43  ;;  %v4563_v36 = vld [vmem:[#allocation98_spill] sm:$0xff] }
 0x4b8   :  { %v1988_v39 = vadd.f32 %v1972_v56, %v1924_v49  ;;  %v1126_v52 = vadd.f32 %v4545_v12, %v934_v50  ;;  %v1127_v61 = vadd.f32 %v4551_v30, %v935_v6  ;;  %v4553_v49 = vld [vmem:[#allocation135_spill] sm:$0xff]  ;;  %v1596_v20 = vpop.permute.xlu1 %1595  ;;  %v4557_v50 = vld [vmem:[#allocation120_spill] sm:$0xff] }
 0x4b9   :  { %v1208_v2 = vsub.f32 %v3920_v51, %v4553_v49  ;;  %v1628_v35 = vadd.f32 %v1596_v20, %v4562_v54  ;;  %v4566_v20 = vld [vmem:[#allocation97_spill] sm:$0xff] }
 0x4ba   :  { %2027 = vrot.lane.b32.xlu0 %v1988_v39, %s2286_s22  ;;  %v1238_v45 = vadd.f32 %v1222_v28, %v1126_v52  ;;  %v1239_v24 = vadd.f32 %v1223_v13, %v1127_v61  ;;  %v1975_v28 = vmul.f32 %v1959_v16, %v1319_v63  ;;  %v4568_v63 = vld [vmem:[#allocation82_spill] sm:$0xff] }
 0x4bb   :  { %v1710_v34 = vpop.permute.xlu0 %1709 }
 0x4bc   :  { %v1749_v21 = vadd.f32 %v1710_v34, %v1621_v53  ;;  %v1622_v55 = vadd.f32 %v4000_v27, %v1238_v45  ;;  %v4554_v27 = vld [vmem:[#allocation22_spill] sm:$0xff]  ;;  %v1623_v60 = vadd.f32 %v4016_v38, %v1239_v24  ;;  %v1224_v34 = vmul.f32 %v1208_v2, %v3464_v19 }
 0x4bd   :  { %v232_v39 = vmul.f32 %v3920_v51, %v4554_v27 }
 0x4be   :  { %v1925_v42 = vadd.f32 %v1886_v5, %v1749_v21  ;;  %v1892_v17 = vpop.permute.xlu2 %1891  ;;  %v1944_v21 = vsub.f32 1.0, %v3920_v51  ;;  %v1964_v51 = vmul.f32 0.5, %v1948_v32  ;;  %v4570_v32 = vld [vmem:[#allocation67_spill] sm:$0xff] }
 0x4c0   :  { %v1989_v11 = vadd.f32 %v1973_v14, %v1925_v42  ;;  %v4558_v14 = vld [vmem:[#allocation80_spill] sm:$0xff]  ;;  %v1960_v45 = vmul.f32 0.5, %v1944_v21  ;;  %v1724_v25 = vpop.permute.xlu1 %1723 }
 0x4c1   :  { %v1209_v38 = vsub.f32 %v3933_v47, %v4558_v14  ;;  %v1756_v61 = vadd.f32 %v1724_v25, %v1628_v35 }
 0x4c2   :  { %2029 = vrot.lane.b32.xlu2 %v1989_v11, %s2286_s22  ;;  %v4560_v11 = vld [vmem:[#allocation71_spill] sm:$0xff] }
 0x4c3   :  { %v1712_v5 = vpop.permute.xlu0 %1711  ;;  %v1320_v22 = vadd.f32 %v4560_v11, %v3464_v19  ;;  %v4571_v11 = vld [vmem:[#allocation76_spill] sm:$0xff] }
 0x4c4   :  { %v1750_v23 = vadd.f32 %v1712_v5, %v1622_v55  ;;  %v937_v55 = vadd.f32 %v4563_v36, %v233_v9  ;;  %v1225_v5 = vmul.f32 %v1209_v38, %v3428_v10 }
 0x4c5   :  { %v1976_v29 = vmul.f32 %v1960_v45, %v1320_v22  ;;  %v4572_v22 = vld [vmem:[#allocation25_spill] sm:$0xff] }
 0x4c6   :  { %v1926_v56 = vadd.f32 %v1888_v33, %v1750_v23  ;;  %v1894_v8 = vpop.permute.xlu2 %1893  ;;  %v4556_v33 = vld [vmem:[#allocation105_spill] sm:$0xff]  ;;  %v4564_v23 = vld [vmem:[#allocation124_spill] sm:$0xff] }
 0x4c7   :  { %v936_v53 = vadd.f32 %v4556_v33, %v232_v39  ;;  %v1129_v19 = vadd.f32 %v4564_v23, %v937_v55  ;;  %v4567_v39 = vld [vmem:[#allocation132_spill] sm:$0xff] }
 0x4c8   :  { %v1990_v46 = vadd.f32 %v1974_v18, %v1926_v56  ;;  %v234_v56 = vmul.f32 %v3950_v4, %v4565_v48  ;;  %v1210_v16 = vsub.f32 %v3950_v4, %v4567_v39 }
 0x4c9   :  { %v1128_v57 = vadd.f32 %v4557_v50, %v936_v53  ;;  %v1241_v2 = vadd.f32 %v1225_v5, %v1129_v19  ;;  %v1946_v50 = vsub.f32 1.0, %v3950_v4 }
 0x4ca   :  { %2031 = vrot.lane.b32.xlu1 %v1990_v46, %s2286_s22  ;;  %v938_v46 = vadd.f32 %v4566_v20, %v234_v56 }
 0x4cb   :  { %v1714_v1 = vpop.permute.xlu0 %1713  ;;  %v1240_v42 = vadd.f32 %v1224_v34, %v1128_v57  ;;  %v1226_v34 = vmul.f32 %v1210_v16, %v3420_v44 }
 0x4cc   :  { %v1751_v31 = vadd.f32 %v1714_v1, %v1623_v60  ;;  %v4569_v1 = vld [vmem:[#allocation133_spill] sm:$0xff] }
 0x4cd   :  { %v1624_v6 = vadd.f32 %v4032_v15, %v1240_v42  ;;  %v1945_v15 = vsub.f32 1.0, %v3933_v47  ;;  %v1321_v47 = vadd.f32 %v4568_v63, %v3428_v10  ;;  %v1130_v33 = vadd.f32 %v4569_v1, %v938_v46 }
 0x4ce   :  { %v1927_v12 = vadd.f32 %v1890_v0, %v1751_v31  ;;  %v1896_v52 = vpop.permute.xlu2 %1895  ;;  %v1324_v0 = vadd.f32 %v4561_v58, %v3446_v7  ;;  %v1322_v10 = vadd.f32 %v4570_v32, %v3420_v44  ;;  %v1323_v44 = vadd.f32 %v4571_v11, %v3480_v59 }
 0x4cf   :  { %v1961_v41 = vmul.f32 0.5, %v1945_v15 }
 0x4d0   :  { %v1991_v26 = vadd.f32 %v1975_v28, %v1927_v12  ;;  %v1980_v7 = vmul.f32 %v1964_v51, %v1324_v0  ;;  %v1242_v28 = vadd.f32 %v1226_v34, %v1130_v33  ;;  %v1962_v12 = vmul.f32 0.5, %v1946_v50 }
 0x4d1   :  { %v1977_v31 = vmul.f32 %v1961_v41, %v1321_v47 }
 0x4d2   :  { %2033 = vrot.lane.b32.xlu0 %v1991_v26, %s2286_s22  ;;  %v1978_v42 = vmul.f32 %v1962_v12, %v1322_v10 }
 0x4d3   :  { %v1716_v37 = vpop.permute.xlu0 %1715 }
 0x4d4   :  { %v1752_v30 = vadd.f32 %v1716_v37, %v1624_v6 }
 0x4d6   :  { %v1928_v13 = vadd.f32 %v1892_v17, %v1752_v30  ;;  %v1900_v18 = vpop.permute.xlu2 %1899  ;;  %v1625_v17 = vadd.f32 %v4052_v3, %v1241_v2  ;;  %v1626_v3 = vadd.f32 %v4068_v62, %v1242_v28  ;;  %v1627_v62 = vadd.f32 %v4084_v40, %v4572_v22 }
 0x4d7   :  { %v1932_v49 = vadd.f32 %v1900_v18, %v1756_v61 }
 0x4d8   :  { %v1992_v24 = vadd.f32 %v1976_v29, %v1928_v13 }
 0x4d9   :  { %v1996_v27 = vadd.f32 %v1980_v7, %v1932_v49 }
 0x4da   :  { %2035 = vrot.lane.b32.xlu2 %v1992_v24, %s2286_s22 }
 0x4db   :  { %v1718_v60 = vpop.permute.xlu0 %1717 }
 0x4dc   :  { %v1753_v53 = vadd.f32 %v1718_v60, %v1625_v17 }
 0x4de   :  { %v1929_v57 = vadd.f32 %v1894_v8, %v1753_v53  ;;  %v2200_v8 = vld [vmem:[#allocation5 + $0x70] sm:$0xff]  ;;  %v2018_v37 = vpop.permute.xlu2 %2017 }
 0x4df   :  { %v1947_v9 = vsub.f32 1.0, %v2200_v8  ;;  %v2065_v40 = vsel %vm2061_vm1, %v2018_v37, 0.0 }
 0x4e0   :  { %v1993_v21 = vadd.f32 %v1977_v31, %v1929_v57 }
 0x4e1   :  { %v1963_v45 = vmul.f32 0.5, %v1947_v9 }
 0x4e2   :  { %2037 = vrot.lane.b32.xlu1 %v1993_v21, %s2286_s22 }
 0x4e3   :  { %v1720_v14 = vpop.permute.xlu0 %1719  ;;  %v1979_v51 = vmul.f32 %v1963_v45, %v1323_v44 }
 0x4e4   :  { %v1754_v38 = vadd.f32 %v1720_v14, %v1626_v3 }
 0x4e6   :  { %v1930_v26 = vadd.f32 %v1896_v52, %v1754_v38 }
 0x4e8   :  { %v1994_v43 = vadd.f32 %v1978_v42, %v1930_v26 }
 0x4ea   :  { %2043 = vrot.lane.b32.xlu1 %v1996_v27, %s2286_s22  ;;  %2039 = vrot.lane.b32.xlu0 %v1994_v43, %s2286_s22 }
 0x4eb   :  { %v1722_v4 = vpop.permute.xlu0 %1721 }
 0x4ec   :  { %v1755_v6 = vadd.f32 %v1722_v4, %v1627_v62 }
 0x4f3   :  { %v1898_v25 = vpop.permute.xlu0 %1897 }
 0x4f4   :  { %v1931_v58 = vadd.f32 %v1898_v25, %v1755_v6 }
 0x4f6   :  { %v1995_v52 = vadd.f32 %v1979_v51, %v1931_v58 }
 0x4f8   :  { %2041 = vrot.lane.b32.xlu2 %v1995_v52, %s2286_s22 }
 0x4fb   :  { %v2016_v54 = vpop.permute.xlu0 %2015 }
 0x4fc   :  { %v2063_v55 = vsel %vm2061_vm1, %v2016_v54, 0.0 }
 0x502   :  { %v2014_v0 = vpop.permute.xlu1 %2013 }
 0x503   :  { %v2062_v35 = vsel %vm2061_vm1, %v2014_v0, 0.0 }
 0x504   :  { %v2064_v59 = vadd.f32 %v2063_v55, %v2062_v35  ;;  %v2024_v19 = vpop.permute.xlu2 %2023 }
 0x505   :  { %v2071_v48 = vsel %vm2061_vm1, %v2024_v19, 0.0 }
 0x506   :  { %v2066_v61 = vadd.f32 %v2065_v40, %v2064_v59 }
 0x50c   :  { %v2020_v36 = vpop.permute.xlu1 %2019 }
 0x50d   :  { %v2067_v30 = vsel %vm2061_vm1, %v2020_v36, 0.0 }
 0x50e   :  { %v2068_v15 = vadd.f32 %v2067_v30, %v2066_v61 }
 0x514   :  { %v2022_v5 = vpop.permute.xlu0 %2021 }
 0x515   :  { %v2069_v23 = vsel %vm2061_vm1, %v2022_v5, 0.0 }
 0x516   :  { %v2070_v13 = vadd.f32 %v2069_v23, %v2068_v15 }
 0x518   :  { %v2072_v7 = vadd.f32 %v2071_v48, %v2070_v13 }
 0x51c   :  { %v2030_v2 = vpop.permute.xlu2 %2029 }
 0x51d   :  { %v2077_v39 = vsel %vm2061_vm1, %v2030_v2, 0.0 }
 0x524   :  { %v2026_v29 = vpop.permute.xlu1 %2025 }
 0x525   :  { %v2073_v56 = vsel %vm2061_vm1, %v2026_v29, 0.0 }
 0x526   :  { %v2074_v24 = vadd.f32 %v2073_v56, %v2072_v7 }
 0x52c   :  { %v2028_v18 = vpop.permute.xlu0 %2027 }
 0x52d   :  { %v2075_v49 = vsel %vm2061_vm1, %v2028_v18, 0.0 }
 0x52e   :  { %v2076_v46 = vadd.f32 %v2075_v49, %v2074_v24 }
 0x530   :  { %v2078_v41 = vadd.f32 %v2077_v39, %v2076_v46 }
 0x534   :  { %v2036_v47 = vpop.permute.xlu2 %2035 }
 0x535   :  { %v2083_v33 = vsel %vm2061_vm1, %v2036_v47, 0.0 }
 0x53c   :  { %v2032_v20 = vpop.permute.xlu1 %2031 }
 0x53d   :  { %v2079_v16 = vsel %vm2061_vm1, %v2032_v20, 0.0 }
 0x53e   :  { %v2080_v17 = vadd.f32 %v2079_v16, %v2078_v41 }
 0x544   :  { %v2034_v27 = vpop.permute.xlu0 %2033 }
 0x545   :  { %v2081_v63 = vsel %vm2061_vm1, %v2034_v27, 0.0 }
 0x546   :  { %v2082_v1 = vadd.f32 %v2081_v63, %v2080_v17 }
 0x548   :  { %v2084_v34 = vadd.f32 %v2083_v33, %v2082_v1 }
 0x552   :  { %v2042_v31 = vpop.permute.xlu2 %2041 }
 0x553   :  { %v2089_v32 = vsel %vm2061_vm1, %v2042_v31, 0.0 }
 0x554   :  { %v2038_v60 = vpop.permute.xlu1 %2037 }
 0x555   :  { %v2085_v53 = vsel %vm2061_vm1, %v2038_v60, 0.0 }
 0x556   :  { %v2086_v50 = vadd.f32 %v2085_v53, %v2084_v34 }
 0x55c   :  { %v2040_v57 = vpop.permute.xlu0 %2039  ;;  %v2044_v21 = vpop.permute.xlu1 %2043 }
 0x55d   :  { %v2087_v28 = vsel %vm2061_vm1, %v2040_v57, 0.0  ;;  %v2091_v3 = vsel %vm2061_vm1, %v2044_v21, 0.0 }
 0x55e   :  { %v2088_v12 = vadd.f32 %v2087_v28, %v2086_v50 }
 0x560   :  { %v2090_v10 = vadd.f32 %v2089_v32, %v2088_v12 }
 0x562   :  { %v2092_v14 = vadd.f32 %v2091_v3, %v2090_v10 }
 0x564   :  { %2093 = vadd.xlane.f32.xlu0 %v2092_v14 }
 0x5d7   :  { %v2094_v38 = vpop.xlane.xlu0 %2093 }
 0x5d8   :  { %v2095_v42 = vrot.slane %v2094_v38, 4 }
 0x5da   :  { %v2096_v26 = vadd.f32 %v2095_v42, %v2094_v38 }
 0x5dc   :  { %v2097_v43 = vrot.slane %v2096_v26, 2 }
 0x5de   :  { %v2098_v4 = vadd.f32 %v2097_v43, %v2096_v26 }
 0x5e0   :  { %v2099_v8 = vrot.slane %v2098_v4, 1 }
 0x5e2   :  { %v2100_v9 = vadd.f32 %v2099_v8, %v2098_v4 }
 0x5e4   :  { %2122 = vpush %v2100_v9 }
 0x615   :  { %s2123_s30 = spop %2122 }
 0x616   :  { %v2102_v45 = vstv %s2123_s30 }
 0x617   :  { %2103 = vst [vmem:[#allocation7] sm:$0xff] %v2102_v45 }
 0x618   :  { %2114 = dma.vmem_to_hbm [thread:$0]  %s2110_s29, 128, %s2112_s27, [#allocation4]  }
 0x619   :  { %2277 = dma.done.wait [#allocation4], 128  }
 0x61a   :  { %2278 = vsyncadd [#allocation4], 4294967168 }
 0x61b   :  { %2119 = vsyncpa [#allocation3], 1 }
 0x61c   :  { %2120 = vsyncpa [#allocation6], 1 }
 0x61d   :  { %2121 = vsyncpa [#allocation4], 1 }

</bundles_post_ra>
